<compile_context>
chip_gen: v7x
topology: tpu7x:2x2x1
jax: 0.10.0
libtpu: 0.0.40
codegen_flags: <defaults>
</compile_context>

<pallas_src>
import jax
import jax.numpy as jnp
from jax.experimental import pallas as pl
from jax.experimental.pallas import tpu as pltpu


# -----------------------------------------------------------------------------
# helpers
# -----------------------------------------------------------------------------
def _full_spec(x):
    """Full-array block (exempt from the (8,128) divisibility rule)."""
    nd = x.ndim
    return pl.BlockSpec(x.shape, lambda i, _nd=nd: (0,) * _nd)


def _im2col_nchw(x, kh=3, kw=3, pad=1):
    # TODO(synk): at production H,W replace host-side im2col (9x HBM expansion,
    # worst on v5e's ~0.8 TB/s HBM) with in-kernel shift-and-accumulate conv.
    N, C, H, W = x.shape
    xp = jnp.pad(x, ((0, 0), (0, 0), (pad, pad), (pad, pad)))
    cols = [xp[:, :, dy:dy + H, dx:dx + W] for dy in range(kh) for dx in range(kw)]
    patches = jnp.stack(cols, axis=2)            # (N, C, kh*kw, H, W)
    patches = patches.transpose(0, 3, 4, 1, 2)   # (N, H, W, C, kh*kw)
    return patches.reshape(N * H * W, C * kh * kw)


class _Slab:
    """Pack many tiny 2-D operands into one (rows, COLS) slab -> one DMA."""

    def __init__(self, ncols, dtype, row_align=8):
        self.ncols = ncols
        self.dtype = dtype
        self.row_align = row_align
        self.pieces = []
        self.row = 0

    def add(self, mat):
        mat = jnp.asarray(mat, jnp.float32)
        if mat.ndim == 1:
            mat = mat.reshape(1, -1)
        r, c = mat.shape
        assert c <= self.ncols, (c, self.ncols)
        rp = -(-r // self.row_align) * self.row_align
        self.pieces.append(jnp.pad(mat, ((0, rp - r), (0, self.ncols - c))))
        entry = (self.row, r, c)                 # (row offset, rows, cols) -- static
        self.row += rp
        return entry

    def build(self):
        return jnp.concatenate(self.pieces, axis=0).astype(self.dtype)


# -----------------------------------------------------------------------------
# AttackNet forward: ONE fused pallas_call
# -----------------------------------------------------------------------------
def attacknet_forward(params, gradients, activation_values, metrics, loss, label):
    B = loss.shape[0]          # batch_size = loss.size(0)
    R = loss.shape[1]          # rounds (round_multiplier)
    N = B * R

    wlab, blab = params["label"]
    wlo, blo = params["loss"]
    w1, b1 = params["encoder1"]
    w2, b2 = params["encoder2"]
    HID = wlab.shape[1]
    E, EH = w1.shape
    O = w2.shape[1]

    # ---- conv components (gradients first, then metrics -- torch.cat order) ----
    conv_entries = []

    def _add_conv(comp, x):
        cw, cb, fw, fb = comp
        Cc, Hc, Wc = x.shape[-3:]
        # Rows ordered round-major (row = r*B + b): each per-round block used by the
        # encoder1 decomposition is then a contiguous slice of B rows.
        xr = jnp.transpose(x.reshape(B, R, Cc, Hc, Wc),
                           (1, 0, 2, 3, 4)).reshape(N, Cc, Hc, Wc)
        conv_entries.append(dict(
            patches=_im2col_nchw(xr).astype(jnp.bfloat16),       # (N*HW, C*9)
            HW=Hc * Wc, Kc=cw.shape[0], HIDc=fw.shape[1],
            wmat=cw.reshape(cw.shape[0], -1).T,                  # (C*9, Kc) torch layout
            cb=cb, fw=fw, fb=fb))

    for comp, g in zip(params["gradient"], gradients):
        _add_conv(comp, g)
    for key in metrics:
        for comp, m in zip(params["metrics"][key], metrics[key]):
            _add_conv(comp, m)
    n_conv = len(conv_entries)

    # ---- activation inputs, round-major rows ----
    acts_rb = [jnp.transpose(a.reshape(B, R, -1), (1, 0, 2)).reshape(N, -1)
               .astype(jnp.bfloat16) for a in activation_values]
    n_act = len(acts_rb)
    assert n_act == len(params["activation"])

    label_bf = label.astype(jnp.bfloat16)
    loss_rb = loss.reshape(B, R).T.reshape(N, 1).astype(jnp.float32)   # row = r*B + b

    # ---- pack weights (bf16 MXU operands) and biases/small f32 rows into 2 slabs ----
    widths = [EH, HID, O, wlab.shape[1]] + [wa.shape[1] for wa, _ in params["activation"]]
    for e in conv_entries:
        widths += [e["Kc"], e["HIDc"]]
    COLS = max(widths)

    wsl = _Slab(COLS, jnp.bfloat16)
    bsl = _Slab(COLS, jnp.float32)

    w_lab = wsl.add(wlab)
    b_lab = bsl.add(blab)
    b_wlo = bsl.add(wlo.reshape(1, -1))      # loss weight stays f32 (VPU broadcast)
    b_blo = bsl.add(blo)
    w_act, b_act = [], []
    for (wa, ba) in params["activation"]:
        w_act.append(wsl.add(wa))
        b_act.append(bsl.add(ba))
    for e in conv_entries:
        e["w_conv"] = wsl.add(e["wmat"])
        e["b_conv"] = bsl.add(e["cb"])
        e["w_fc"] = wsl.add(e["fw"])
        e["b_fc"] = bsl.add(e["fb"])
    w_e1 = wsl.add(w1)
    b_e1 = bsl.add(b1)
    w_e2 = wsl.add(w2)
    b_e2 = bsl.add(b2)

    wslab = wsl.build()
    bslab = bsl.build()
    w1_row0 = w_e1[0]

    # ---- the single fused kernel ----
    def kernel(*refs):
        it = iter(refs)
        patch_refs = [next(it) for _ in range(n_conv)]
        label_ref = next(it)
        loss_ref = next(it)
        act_refs = [next(it) for _ in range(n_act)]
        w_ref = next(it)
        b_ref = next(it)
        o_ref = next(it)

        def W(entry):
            r0, nr, nc = entry
            return w_ref[r0:r0 + nr, :nc]

        def Bv(entry):
            r0, nr, nc = entry
            return b_ref[r0:r0 + nr, :nc]

        def w1_block(col_off, length):
            return w_ref[w1_row0 + col_off:w1_row0 + col_off + length, :EH]

        # encoder1 as a sum of block matmuls (exact decomposition of
        # concat-then-matmul) -> no (B, E) slab, no masked narrow stores.
        state = {"acc": jnp.zeros((B, EH), jnp.float32), "off": 0}

        def add_block(piece_f32, length):          # piece (B, length)
            state["acc"] = state["acc"] + jnp.dot(
                piece_f32.astype(jnp.bfloat16), w1_block(state["off"], length),
                preferred_element_type=jnp.float32)
            state["off"] += length

        def add_rounds(piece_f32, length):         # piece (R*B, length), round-major rows
            p = piece_f32.astype(jnp.bfloat16)
            for r in range(R):
                state["acc"] = state["acc"] + jnp.dot(
                    p[r * B:(r + 1) * B, :], w1_block(state["off"], length),
                    preferred_element_type=jnp.float32)
                state["off"] += length

        # label component: Linear + ReLU
        lab = jnp.dot(label_ref[...], W(w_lab), preferred_element_type=jnp.float32)
        add_block(jnp.maximum(lab + Bv(b_lab), 0.0), HID)

        # loss component: Linear(1 -> HID) == rank-1 VPU broadcast, all rounds at once
        loss_h = jnp.maximum(loss_ref[...] * Bv(b_wlo) + Bv(b_blo), 0.0)  # (R*B, HID) f32
        add_rounds(loss_h, HID)

        # activation components: ONE (R*B, F) @ (F, HID) matmul per component
        for i in range(n_act):
            a_h = jnp.dot(act_refs[i][...], W(w_act[i]),
                          preferred_element_type=jnp.float32)
            add_rounds(jnp.maximum(a_h + Bv(b_act[i]), 0.0), HID)

        # conv components (gradients then metrics): conv-as-GEMM -> ReLU ->
        # global-avg-pool (reshape + sublane sum, f32 scale) -> Linear -> ReLU,
        # all kept in VMEM.
        for i, e in enumerate(conv_entries):
            conv = jnp.dot(patch_refs[i][...], W(e["w_conv"]),
                           preferred_element_type=jnp.float32)            # (N*HW, Kc)
            conv = jnp.maximum(conv + Bv(e["b_conv"]), 0.0)
            pooled = jnp.sum(conv.reshape(N, e["HW"], e["Kc"]), axis=1) * (1.0 / e["HW"])
            h = jnp.dot(pooled.astype(jnp.bfloat16), W(e["w_fc"]),
                        preferred_element_type=jnp.float32)               # (N, HIDc)
            add_rounds(jnp.maximum(h + Bv(e["b_fc"]), 0.0), e["HIDc"])

        assert state["off"] == E, (state["off"], E)   # trace-time layout check

        # encoder MLP: ReLU(acc + b1) @ w2 + b2
        h1 = jnp.maximum(state["acc"] + Bv(b_e1), 0.0)
        out = jnp.dot(h1.astype(jnp.bfloat16), W(w_e2),
                      preferred_element_type=jnp.float32) + Bv(b_e2)
        o_ref[...] = out.astype(o_ref.dtype)

    inputs = ([e["patches"] for e in conv_entries] + [label_bf, loss_rb]
              + acts_rb + [wslab, bslab])

    # TODO(synk): at production N*HW, row-tile the patches with a grid (reduction
    # axis "arbitrary"), size tiles against v7x's 64 MiB VMEM (vmem_limit_bytes),
    # and add a "parallel" leading axis over components/rows for v7x's 2 TCs.
    out = pl.pallas_call(
        kernel,
        out_shape=jax.ShapeDtypeStruct((B, O), jnp.float32),
        grid=(1,),
        in_specs=[_full_spec(x) for x in inputs],
        out_specs=pl.BlockSpec((B, O), lambda i: (0, 0)),
        compiler_params=pltpu.CompilerParams(dimension_semantics=("arbitrary",)),
    )(*inputs)

    return jnp.squeeze(out, axis=1) if O == 1 else out


# -----------------------------------------------------------------------------
# Deterministic parameter init (PyTorch-style uniform fan-in bounds)
# -----------------------------------------------------------------------------
def _init_linear(key, fan_in, fan_out):
    k1, k2 = jax.random.split(key)
    bound = 1.0 / jnp.sqrt(jnp.float32(fan_in))
    w = jax.random.uniform(k1, (fan_in, fan_out), jnp.float32, -bound, bound)
    b = jax.random.uniform(k2, (fan_out,), jnp.float32, -bound, bound)
    return w, b


def _init_conv(key, out_ch, in_ch, kh=3, kw=3):
    k1, k2 = jax.random.split(key)
    fan_in = in_ch * kh * kw
    bound = 1.0 / jnp.sqrt(jnp.float32(fan_in))
    w = jax.random.uniform(k1, (out_ch, in_ch, kh, kw), jnp.float32, -bound, bound)
    b = jax.random.uniform(k2, (out_ch,), jnp.float32, -bound, bound)
    return w, b


# -----------------------------------------------------------------------------
# Main
# -----------------------------------------------------------------------------
if __name__ == "__main__":
    B, R = 2, 2                 # batch, rounds (round_multiplier)
    NUM_CLASSES = 4
    ACT_FEAT = 16
    GRAD_SHAPES = [(R, 4, 8, 8)]          # per-sample gradient shapes
    METRIC_SHAPES = {"m0": [(R, 2, 8, 8)]}
    HID = 8                               # per-component output features
    CONV_OUT = 8
    ENC_HIDDEN = 32
    OUTPUT_SIZE = 1

    # deterministic parameters
    pkeys = jax.random.split(jax.random.PRNGKey(42), 16)
    params = {
        "label": _init_linear(pkeys[0], NUM_CLASSES, HID),
        "loss": _init_linear(pkeys[1], 1, HID),
        "activation": [
            _init_linear(pkeys[2], ACT_FEAT, HID),
            _init_linear(pkeys[3], ACT_FEAT, HID),
        ],
        "gradient": [],
        "metrics": {},
    }
    for i, gs in enumerate(GRAD_SHAPES):
        cw, cb = _init_conv(pkeys[4 + i], CONV_OUT, gs[-3])
        fw, fb = _init_linear(pkeys[6 + i], CONV_OUT, HID)
        params["gradient"].append((cw, cb, fw, fb))
    ki = 8
    for mkey, shapes in METRIC_SHAPES.items():
        comps = []
        for ms in shapes:
            cw, cb = _init_conv(pkeys[ki], CONV_OUT, ms[-3]); ki += 1
            fw, fb = _init_linear(pkeys[ki], CONV_OUT, HID); ki += 1
            comps.append((cw, cb, fw, fb))
        params["metrics"][mkey] = comps

    n_act = len(params["activation"])
    n_grad = len(GRAD_SHAPES)
    n_met = sum(len(v) for v in METRIC_SHAPES.values())
    enc_size = HID + R * HID + n_act * R * HID + n_grad * R * HID + n_met * R * HID
    params["encoder1"] = _init_linear(pkeys[14], enc_size, ENC_HIDDEN)
    params["encoder2"] = _init_linear(pkeys[15], ENC_HIDDEN, OUTPUT_SIZE)

    # deterministic inputs
    ik = jax.random.split(jax.random.PRNGKey(0), 6)
    label = jax.nn.one_hot(
        jax.random.randint(ik[0], (B,), 0, NUM_CLASSES), NUM_CLASSES
    ).astype(jnp.float32)                                           # (B, 4)
    loss = jax.random.uniform(ik[1], (B, R, 1), jnp.float32)        # (B, R, 1)
    activation_values = [
        jax.random.normal(ik[2], (B, R, ACT_FEAT), jnp.float32),
        jax.random.normal(ik[3], (B, R, ACT_FEAT), jnp.float32),
    ]
    gradients = [jax.random.normal(ik[4], (B, R) + GRAD_SHAPES[0][-3:], jnp.float32)]
    metrics = {"m0": [jax.random.normal(ik[5], (B, R) + METRIC_SHAPES["m0"][0][-3:],
                                        jnp.float32)]}

    fwd = jax.jit(attacknet_forward)
    prediction = fwd(params, gradients, activation_values, metrics, loss, label)
    prediction = jax.block_until_ready(prediction)
    assert prediction.shape == (B,), prediction.shape
    assert jnp.all(jnp.isfinite(prediction))
    print("KERNEL_OK")
</pallas_src>

<mosaic_0001>
module attributes {stable_mosaic.version = 11 : i64} {
  func.func @kernel(%arg0: i32, %arg1: memref<256x36xbf16, #tpu.memory_space<vmem>>, %arg2: memref<256x18xbf16, #tpu.memory_space<vmem>>, %arg3: memref<2x4xbf16, #tpu.memory_space<vmem>>, %arg4: memref<4x1xf32, #tpu.memory_space<vmem>>, %arg5: memref<4x16xbf16, #tpu.memory_space<vmem>>, %arg6: memref<4x16xbf16, #tpu.memory_space<vmem>>, %arg7: memref<240x32xbf16, #tpu.memory_space<vmem>>, %arg8: memref<88x32xf32, #tpu.memory_space<vmem>>, %arg9: memref<2x1xf32, #tpu.memory_space<vmem>>) attributes {dimension_semantics = [#tpu.dimension_semantics<arbitrary>], iteration_bounds = array<i64: 1>, scalar_prefetch = 0 : i64, scratch_operands = 0 : i64, tpu.core_type = #tpu.core_type<tc>, window_params = [{pipeline_mode = #tpu.pipeline_mode<synchronous>, transform_indices = @transform_0, window_bounds = array<i64: 256, 36>}, {pipeline_mode = #tpu.pipeline_mode<synchronous>, transform_indices = @transform_1, window_bounds = array<i64: 256, 18>}, {pipeline_mode = #tpu.pipeline_mode<synchronous>, transform_indices = @transform_2, window_bounds = array<i64: 2, 4>}, {pipeline_mode = #tpu.pipeline_mode<synchronous>, transform_indices = @transform_3, window_bounds = array<i64: 4, 1>}, {pipeline_mode = #tpu.pipeline_mode<synchronous>, transform_indices = @transform_4, window_bounds = array<i64: 4, 16>}, {pipeline_mode = #tpu.pipeline_mode<synchronous>, transform_indices = @transform_5, window_bounds = array<i64: 4, 16>}, {pipeline_mode = #tpu.pipeline_mode<synchronous>, transform_indices = @transform_6, window_bounds = array<i64: 240, 32>}, {pipeline_mode = #tpu.pipeline_mode<synchronous>, transform_indices = @transform_7, window_bounds = array<i64: 88, 32>}, {pipeline_mode = #tpu.pipeline_mode<synchronous>, transform_indices = @transform_8, window_bounds = array<i64: 2, 1>}]} {
    %cst = arith.constant 0.000000e+00 : f32
    %0 = vector.broadcast %cst : f32 to vector<2x32xf32>
    %c0 = arith.constant 0 : index
    %c0_0 = arith.constant 0 : index
    %1 = vector.load %arg3[%c0, %c0_0] : memref<2x4xbf16, #tpu.memory_space<vmem>>, vector<2x4xbf16>
    %c0_1 = arith.constant 0 : index
    %c0_2 = arith.constant 0 : index
    %2 = vector.load %arg7[%c0_1, %c0_2] : memref<240x32xbf16, #tpu.memory_space<vmem>>, vector<4x8xbf16>
    %cst_3 = arith.constant dense<0.000000e+00> : vector<2x8xf32>
    %3 = tpu.matmul %1, %2, %cst_3 {dimension_numbers = #tpu.dot_dimension_numbers<[1], [0], [0], [1], [0, 0, 1, 1], [], []>} : vector<2x4xbf16>, vector<4x8xbf16>, vector<2x8xf32> -> vector<2x8xf32>
    %c0_4 = arith.constant 0 : index
    %c0_5 = arith.constant 0 : index
    %4 = vector.load %arg8[%c0_4, %c0_5] : memref<88x32xf32, #tpu.memory_space<vmem>>, vector<1x8xf32>
    %5 = vector.broadcast %4 : vector<1x8xf32> to vector<2x8xf32>
    %6 = arith.addf %3, %5 : vector<2x8xf32>
    %cst_6 = arith.constant 0.000000e+00 : f32
    %7 = vector.broadcast %cst_6 : f32 to vector<2x8xf32>
    %8 = arith.maximumf %6, %7 : vector<2x8xf32>
    %9 = arith.truncf %8 : vector<2x8xf32> to vector<2x8xbf16>
    %c120 = arith.constant 120 : index
    %c0_7 = arith.constant 0 : index
    %10 = vector.load %arg7[%c120, %c0_7] : memref<240x32xbf16, #tpu.memory_space<vmem>>, vector<8x32xbf16>
    %cst_8 = arith.constant dense<0.000000e+00> : vector<2x32xf32>
    %11 = tpu.matmul %9, %10, %cst_8 {dimension_numbers = #tpu.dot_dimension_numbers<[1], [0], [0], [1], [0, 0, 1, 1], [], []>} : vector<2x8xbf16>, vector<8x32xbf16>, vector<2x32xf32> -> vector<2x32xf32>
    %12 = arith.addf %0, %11 : vector<2x32xf32>
    %c0_9 = arith.constant 0 : index
    %c0_10 = arith.constant 0 : index
    %13 = vector.load %arg4[%c0_9, %c0_10] : memref<4x1xf32, #tpu.memory_space<vmem>>, vector<4x1xf32>
    %c8 = arith.constant 8 : index
    %c0_11 = arith.constant 0 : index
    %14 = vector.load %arg8[%c8, %c0_11] : memref<88x32xf32, #tpu.memory_space<vmem>>, vector<1x8xf32>
    %15 = vector.broadcast %13 : vector<4x1xf32> to vector<4x8xf32>
    %16 = vector.broadcast %14 : vector<1x8xf32> to vector<4x8xf32>
    %17 = arith.mulf %15, %16 : vector<4x8xf32>
    %c16 = arith.constant 16 : index
    %c0_12 = arith.constant 0 : index
    %18 = vector.load %arg8[%c16, %c0_12] : memref<88x32xf32, #tpu.memory_space<vmem>>, vector<1x8xf32>
    %19 = vector.broadcast %18 : vector<1x8xf32> to vector<4x8xf32>
    %20 = arith.addf %17, %19 : vector<4x8xf32>
    %cst_13 = arith.constant 0.000000e+00 : f32
    %21 = vector.broadcast %cst_13 : f32 to vector<4x8xf32>
    %22 = arith.maximumf %20, %21 : vector<4x8xf32>
    %23 = arith.truncf %22 : vector<4x8xf32> to vector<4x8xbf16>
    %24 = vector.extract_strided_slice %23 {offsets = [0, 0], sizes = [2, 8], strides = [1, 1]} : vector<4x8xbf16> to vector<2x8xbf16>
    %c128 = arith.constant 128 : index
    %c0_14 = arith.constant 0 : index
    %25 = vector.load %arg7[%c128, %c0_14] : memref<240x32xbf16, #tpu.memory_space<vmem>>, vector<8x32xbf16>
    %cst_15 = arith.constant dense<0.000000e+00> : vector<2x32xf32>
    %26 = tpu.matmul %24, %25, %cst_15 {dimension_numbers = #tpu.dot_dimension_numbers<[1], [0], [0], [1], [0, 0, 1, 1], [], []>} : vector<2x8xbf16>, vector<8x32xbf16>, vector<2x32xf32> -> vector<2x32xf32>
    %27 = arith.addf %12, %26 : vector<2x32xf32>
    %28 = vector.extract_strided_slice %23 {offsets = [2, 0], sizes = [2, 8], strides = [1, 1]} : vector<4x8xbf16> to vector<2x8xbf16>
    %c136 = arith.constant 136 : index
    %c0_16 = arith.constant 0 : index
    %29 = vector.load %arg7[%c136, %c0_16] : memref<240x32xbf16, #tpu.memory_space<vmem>>, vector<8x32xbf16>
    %cst_17 = arith.constant dense<0.000000e+00> : vector<2x32xf32>
    %30 = tpu.matmul %28, %29, %cst_17 {dimension_numbers = #tpu.dot_dimension_numbers<[1], [0], [0], [1], [0, 0, 1, 1], [], []>} : vector<2x8xbf16>, vector<8x32xbf16>, vector<2x32xf32> -> vector<2x32xf32>
    %31 = arith.addf %27, %30 : vector<2x32xf32>
    %c0_18 = arith.constant 0 : index
    %c0_19 = arith.constant 0 : index
    %32 = vector.load %arg5[%c0_18, %c0_19] : memref<4x16xbf16, #tpu.memory_space<vmem>>, vector<4x16xbf16>
    %c8_20 = arith.constant 8 : index
    %c0_21 = arith.constant 0 : index
    %33 = vector.load %arg7[%c8_20, %c0_21] : memref<240x32xbf16, #tpu.memory_space<vmem>>, vector<16x8xbf16>
    %cst_22 = arith.constant dense<0.000000e+00> : vector<4x8xf32>
    %34 = tpu.matmul %32, %33, %cst_22 {dimension_numbers = #tpu.dot_dimension_numbers<[1], [0], [0], [1], [0, 0, 1, 1], [], []>} : vector<4x16xbf16>, vector<16x8xbf16>, vector<4x8xf32> -> vector<4x8xf32>
    %c24 = arith.constant 24 : index
    %c0_23 = arith.constant 0 : index
    %35 = vector.load %arg8[%c24, %c0_23] : memref<88x32xf32, #tpu.memory_space<vmem>>, vector<1x8xf32>
    %36 = vector.broadcast %35 : vector<1x8xf32> to vector<4x8xf32>
    %37 = arith.addf %34, %36 : vector<4x8xf32>
    %cst_24 = arith.constant 0.000000e+00 : f32
    %38 = vector.broadcast %cst_24 : f32 to vector<4x8xf32>
    %39 = arith.maximumf %37, %38 : vector<4x8xf32>
    %40 = arith.truncf %39 : vector<4x8xf32> to vector<4x8xbf16>
    %41 = vector.extract_strided_slice %40 {offsets = [0, 0], sizes = [2, 8], strides = [1, 1]} : vector<4x8xbf16> to vector<2x8xbf16>
    %c144 = arith.constant 144 : index
    %c0_25 = arith.constant 0 : index
    %42 = vector.load %arg7[%c144, %c0_25] : memref<240x32xbf16, #tpu.memory_space<vmem>>, vector<8x32xbf16>
    %cst_26 = arith.constant dense<0.000000e+00> : vector<2x32xf32>
    %43 = tpu.matmul %41, %42, %cst_26 {dimension_numbers = #tpu.dot_dimension_numbers<[1], [0], [0], [1], [0, 0, 1, 1], [], []>} : vector<2x8xbf16>, vector<8x32xbf16>, vector<2x32xf32> -> vector<2x32xf32>
    %44 = arith.addf %31, %43 : vector<2x32xf32>
    %45 = vector.extract_strided_slice %40 {offsets = [2, 0], sizes = [2, 8], strides = [1, 1]} : vector<4x8xbf16> to vector<2x8xbf16>
    %c152 = arith.constant 152 : index
    %c0_27 = arith.constant 0 : index
    %46 = vector.load %arg7[%c152, %c0_27] : memref<240x32xbf16, #tpu.memory_space<vmem>>, vector<8x32xbf16>
    %cst_28 = arith.constant dense<0.000000e+00> : vector<2x32xf32>
    %47 = tpu.matmul %45, %46, %cst_28 {dimension_numbers = #tpu.dot_dimension_numbers<[1], [0], [0], [1], [0, 0, 1, 1], [], []>} : vector<2x8xbf16>, vector<8x32xbf16>, vector<2x32xf32> -> vector<2x32xf32>
    %48 = arith.addf %44, %47 : vector<2x32xf32>
    %c0_29 = arith.constant 0 : index
    %c0_30 = arith.constant 0 : index
    %49 = vector.load %arg6[%c0_29, %c0_30] : memref<4x16xbf16, #tpu.memory_space<vmem>>, vector<4x16xbf16>
    %c24_31 = arith.constant 24 : index
    %c0_32 = arith.constant 0 : index
    %50 = vector.load %arg7[%c24_31, %c0_32] : memref<240x32xbf16, #tpu.memory_space<vmem>>, vector<16x8xbf16>
    %cst_33 = arith.constant dense<0.000000e+00> : vector<4x8xf32>
    %51 = tpu.matmul %49, %50, %cst_33 {dimension_numbers = #tpu.dot_dimension_numbers<[1], [0], [0], [1], [0, 0, 1, 1], [], []>} : vector<4x16xbf16>, vector<16x8xbf16>, vector<4x8xf32> -> vector<4x8xf32>
    %c32 = arith.constant 32 : index
    %c0_34 = arith.constant 0 : index
    %52 = vector.load %arg8[%c32, %c0_34] : memref<88x32xf32, #tpu.memory_space<vmem>>, vector<1x8xf32>
    %53 = vector.broadcast %52 : vector<1x8xf32> to vector<4x8xf32>
    %54 = arith.addf %51, %53 : vector<4x8xf32>
    %cst_35 = arith.constant 0.000000e+00 : f32
    %55 = vector.broadcast %cst_35 : f32 to vector<4x8xf32>
    %56 = arith.maximumf %54, %55 : vector<4x8xf32>
    %57 = arith.truncf %56 : vector<4x8xf32> to vector<4x8xbf16>
    %58 = vector.extract_strided_slice %57 {offsets = [0, 0], sizes = [2, 8], strides = [1, 1]} : vector<4x8xbf16> to vector<2x8xbf16>
    %c160 = arith.constant 160 : index
    %c0_36 = arith.constant 0 : index
    %59 = vector.load %arg7[%c160, %c0_36] : memref<240x32xbf16, #tpu.memory_space<vmem>>, vector<8x32xbf16>
    %cst_37 = arith.constant dense<0.000000e+00> : vector<2x32xf32>
    %60 = tpu.matmul %58, %59, %cst_37 {dimension_numbers = #tpu.dot_dimension_numbers<[1], [0], [0], [1], [0, 0, 1, 1], [], []>} : vector<2x8xbf16>, vector<8x32xbf16>, vector<2x32xf32> -> vector<2x32xf32>
    %61 = arith.addf %48, %60 : vector<2x32xf32>
    %62 = vector.extract_strided_slice %57 {offsets = [2, 0], sizes = [2, 8], strides = [1, 1]} : vector<4x8xbf16> to vector<2x8xbf16>
    %c168 = arith.constant 168 : index
    %c0_38 = arith.constant 0 : index
    %63 = vector.load %arg7[%c168, %c0_38] : memref<240x32xbf16, #tpu.memory_space<vmem>>, vector<8x32xbf16>
    %cst_39 = arith.constant dense<0.000000e+00> : vector<2x32xf32>
    %64 = tpu.matmul %62, %63, %cst_39 {dimension_numbers = #tpu.dot_dimension_numbers<[1], [0], [0], [1], [0, 0, 1, 1], [], []>} : vector<2x8xbf16>, vector<8x32xbf16>, vector<2x32xf32> -> vector<2x32xf32>
    %65 = arith.addf %61, %64 : vector<2x32xf32>
    %c0_40 = arith.constant 0 : index
    %c0_41 = arith.constant 0 : index
    %66 = vector.load %arg1[%c0_40, %c0_41] : memref<256x36xbf16, #tpu.memory_space<vmem>>, vector<256x36xbf16>
    %c40 = arith.constant 40 : index
    %c0_42 = arith.constant 0 : index
    %67 = vector.load %arg7[%c40, %c0_42] : memref<240x32xbf16, #tpu.memory_space<vmem>>, vector<36x8xbf16>
    %cst_43 = arith.constant dense<0.000000e+00> : vector<256x8xf32>
    %68 = tpu.matmul %66, %67, %cst_43 {dimension_numbers = #tpu.dot_dimension_numbers<[1], [0], [0], [1], [0, 0, 1, 1], [], []>} : vector<256x36xbf16>, vector<36x8xbf16>, vector<256x8xf32> -> vector<256x8xf32>
    %c40_44 = arith.constant 40 : index
    %c0_45 = arith.constant 0 : index
    %69 = vector.load %arg8[%c40_44, %c0_45] : memref<88x32xf32, #tpu.memory_space<vmem>>, vector<1x8xf32>
    %70 = vector.broadcast %69 : vector<1x8xf32> to vector<256x8xf32>
    %71 = arith.addf %68, %70 : vector<256x8xf32>
    %cst_46 = arith.constant 0.000000e+00 : f32
    %72 = vector.broadcast %cst_46 : f32 to vector<256x8xf32>
    %73 = arith.maximumf %71, %72 : vector<256x8xf32>
    %74 = vector.shape_cast %73 : vector<256x8xf32> to vector<4x64x8xf32>
    %cst_47 = arith.constant dense<0.000000e+00> : vector<4x8xf32>
    %75 = vector.multi_reduction <add>, %74, %cst_47 [1] : vector<4x64x8xf32> to vector<4x8xf32>
    %cst_48 = arith.constant 1.562500e-02 : f32
    %76 = vector.broadcast %cst_48 : f32 to vector<4x8xf32>
    %77 = arith.mulf %75, %76 : vector<4x8xf32>
    %78 = arith.truncf %77 : vector<4x8xf32> to vector<4x8xbf16>
    %c80 = arith.constant 80 : index
    %c0_49 = arith.constant 0 : index
    %79 = vector.load %arg7[%c80, %c0_49] : memref<240x32xbf16, #tpu.memory_space<vmem>>, vector<8x8xbf16>
    %cst_50 = arith.constant dense<0.000000e+00> : vector<4x8xf32>
    %80 = tpu.matmul %78, %79, %cst_50 {dimension_numbers = #tpu.dot_dimension_numbers<[1], [0], [0], [1], [0, 0, 1, 1], [], []>} : vector<4x8xbf16>, vector<8x8xbf16>, vector<4x8xf32> -> vector<4x8xf32>
    %c48 = arith.constant 48 : index
    %c0_51 = arith.constant 0 : index
    %81 = vector.load %arg8[%c48, %c0_51] : memref<88x32xf32, #tpu.memory_space<vmem>>, vector<1x8xf32>
    %82 = vector.broadcast %81 : vector<1x8xf32> to vector<4x8xf32>
    %83 = arith.addf %80, %82 : vector<4x8xf32>
    %cst_52 = arith.constant 0.000000e+00 : f32
    %84 = vector.broadcast %cst_52 : f32 to vector<4x8xf32>
    %85 = arith.maximumf %83, %84 : vector<4x8xf32>
    %86 = arith.truncf %85 : vector<4x8xf32> to vector<4x8xbf16>
    %87 = vector.extract_strided_slice %86 {offsets = [0, 0], sizes = [2, 8], strides = [1, 1]} : vector<4x8xbf16> to vector<2x8xbf16>
    %c176 = arith.constant 176 : index
    %c0_53 = arith.constant 0 : index
    %88 = vector.load %arg7[%c176, %c0_53] : memref<240x32xbf16, #tpu.memory_space<vmem>>, vector<8x32xbf16>
    %cst_54 = arith.constant dense<0.000000e+00> : vector<2x32xf32>
    %89 = tpu.matmul %87, %88, %cst_54 {dimension_numbers = #tpu.dot_dimension_numbers<[1], [0], [0], [1], [0, 0, 1, 1], [], []>} : vector<2x8xbf16>, vector<8x32xbf16>, vector<2x32xf32> -> vector<2x32xf32>
    %90 = arith.addf %65, %89 : vector<2x32xf32>
    %91 = vector.extract_strided_slice %86 {offsets = [2, 0], sizes = [2, 8], strides = [1, 1]} : vector<4x8xbf16> to vector<2x8xbf16>
    %c184 = arith.constant 184 : index
    %c0_55 = arith.constant 0 : index
    %92 = vector.load %arg7[%c184, %c0_55] : memref<240x32xbf16, #tpu.memory_space<vmem>>, vector<8x32xbf16>
    %cst_56 = arith.constant dense<0.000000e+00> : vector<2x32xf32>
    %93 = tpu.matmul %91, %92, %cst_56 {dimension_numbers = #tpu.dot_dimension_numbers<[1], [0], [0], [1], [0, 0, 1, 1], [], []>} : vector<2x8xbf16>, vector<8x32xbf16>, vector<2x32xf32> -> vector<2x32xf32>
    %94 = arith.addf %90, %93 : vector<2x32xf32>
    %c0_57 = arith.constant 0 : index
    %c0_58 = arith.constant 0 : index
    %95 = vector.load %arg2[%c0_57, %c0_58] : memref<256x18xbf16, #tpu.memory_space<vmem>>, vector<256x18xbf16>
    %c88 = arith.constant 88 : index
    %c0_59 = arith.constant 0 : index
    %96 = vector.load %arg7[%c88, %c0_59] : memref<240x32xbf16, #tpu.memory_space<vmem>>, vector<18x8xbf16>
    %cst_60 = arith.constant dense<0.000000e+00> : vector<256x8xf32>
    %97 = tpu.matmul %95, %96, %cst_60 {dimension_numbers = #tpu.dot_dimension_numbers<[1], [0], [0], [1], [0, 0, 1, 1], [], []>} : vector<256x18xbf16>, vector<18x8xbf16>, vector<256x8xf32> -> vector<256x8xf32>
    %c56 = arith.constant 56 : index
    %c0_61 = arith.constant 0 : index
    %98 = vector.load %arg8[%c56, %c0_61] : memref<88x32xf32, #tpu.memory_space<vmem>>, vector<1x8xf32>
    %99 = vector.broadcast %98 : vector<1x8xf32> to vector<256x8xf32>
    %100 = arith.addf %97, %99 : vector<256x8xf32>
    %cst_62 = arith.constant 0.000000e+00 : f32
    %101 = vector.broadcast %cst_62 : f32 to vector<256x8xf32>
    %102 = arith.maximumf %100, %101 : vector<256x8xf32>
    %103 = vector.shape_cast %102 : vector<256x8xf32> to vector<4x64x8xf32>
    %cst_63 = arith.constant dense<0.000000e+00> : vector<4x8xf32>
    %104 = vector.multi_reduction <add>, %103, %cst_63 [1] : vector<4x64x8xf32> to vector<4x8xf32>
    %cst_64 = arith.constant 1.562500e-02 : f32
    %105 = vector.broadcast %cst_64 : f32 to vector<4x8xf32>
    %106 = arith.mulf %104, %105 : vector<4x8xf32>
    %107 = arith.truncf %106 : vector<4x8xf32> to vector<4x8xbf16>
    %c112 = arith.constant 112 : index
    %c0_65 = arith.constant 0 : index
    %108 = vector.load %arg7[%c112, %c0_65] : memref<240x32xbf16, #tpu.memory_space<vmem>>, vector<8x8xbf16>
    %cst_66 = arith.constant dense<0.000000e+00> : vector<4x8xf32>
    %109 = tpu.matmul %107, %108, %cst_66 {dimension_numbers = #tpu.dot_dimension_numbers<[1], [0], [0], [1], [0, 0, 1, 1], [], []>} : vector<4x8xbf16>, vector<8x8xbf16>, vector<4x8xf32> -> vector<4x8xf32>
    %c64 = arith.constant 64 : index
    %c0_67 = arith.constant 0 : index
    %110 = vector.load %arg8[%c64, %c0_67] : memref<88x32xf32, #tpu.memory_space<vmem>>, vector<1x8xf32>
    %111 = vector.broadcast %110 : vector<1x8xf32> to vector<4x8xf32>
    %112 = arith.addf %109, %111 : vector<4x8xf32>
    %cst_68 = arith.constant 0.000000e+00 : f32
    %113 = vector.broadcast %cst_68 : f32 to vector<4x8xf32>
    %114 = arith.maximumf %112, %113 : vector<4x8xf32>
    %115 = arith.truncf %114 : vector<4x8xf32> to vector<4x8xbf16>
    %116 = vector.extract_strided_slice %115 {offsets = [0, 0], sizes = [2, 8], strides = [1, 1]} : vector<4x8xbf16> to vector<2x8xbf16>
    %c192 = arith.constant 192 : index
    %c0_69 = arith.constant 0 : index
    %117 = vector.load %arg7[%c192, %c0_69] : memref<240x32xbf16, #tpu.memory_space<vmem>>, vector<8x32xbf16>
    %cst_70 = arith.constant dense<0.000000e+00> : vector<2x32xf32>
    %118 = tpu.matmul %116, %117, %cst_70 {dimension_numbers = #tpu.dot_dimension_numbers<[1], [0], [0], [1], [0, 0, 1, 1], [], []>} : vector<2x8xbf16>, vector<8x32xbf16>, vector<2x32xf32> -> vector<2x32xf32>
    %119 = arith.addf %94, %118 : vector<2x32xf32>
    %120 = vector.extract_strided_slice %115 {offsets = [2, 0], sizes = [2, 8], strides = [1, 1]} : vector<4x8xbf16> to vector<2x8xbf16>
    %c200 = arith.constant 200 : index
    %c0_71 = arith.constant 0 : index
    %121 = vector.load %arg7[%c200, %c0_71] : memref<240x32xbf16, #tpu.memory_space<vmem>>, vector<8x32xbf16>
    %cst_72 = arith.constant dense<0.000000e+00> : vector<2x32xf32>
    %122 = tpu.matmul %120, %121, %cst_72 {dimension_numbers = #tpu.dot_dimension_numbers<[1], [0], [0], [1], [0, 0, 1, 1], [], []>} : vector<2x8xbf16>, vector<8x32xbf16>, vector<2x32xf32> -> vector<2x32xf32>
    %123 = arith.addf %119, %122 : vector<2x32xf32>
    %c72 = arith.constant 72 : index
    %c0_73 = arith.constant 0 : index
    %124 = vector.load %arg8[%c72, %c0_73] : memref<88x32xf32, #tpu.memory_space<vmem>>, vector<1x32xf32>
    %125 = vector.broadcast %124 : vector<1x32xf32> to vector<2x32xf32>
    %126 = arith.addf %123, %125 : vector<2x32xf32>
    %cst_74 = arith.constant 0.000000e+00 : f32
    %127 = vector.broadcast %cst_74 : f32 to vector<2x32xf32>
    %128 = arith.maximumf %126, %127 : vector<2x32xf32>
    %129 = arith.truncf %128 : vector<2x32xf32> to vector<2x32xbf16>
    %c208 = arith.constant 208 : index
    %c0_75 = arith.constant 0 : index
    %130 = vector.load %arg7[%c208, %c0_75] : memref<240x32xbf16, #tpu.memory_space<vmem>>, vector<32x1xbf16>
    %cst_76 = arith.constant dense<0.000000e+00> : vector<2x1xf32>
    %131 = tpu.matmul %129, %130, %cst_76 {dimension_numbers = #tpu.dot_dimension_numbers<[1], [0], [0], [1], [0, 0, 1, 1], [], []>} : vector<2x32xbf16>, vector<32x1xbf16>, vector<2x1xf32> -> vector<2x1xf32>
    %c80_77 = arith.constant 80 : index
    %c0_78 = arith.constant 0 : index
    %132 = vector.load %arg8[%c80_77, %c0_78] : memref<88x32xf32, #tpu.memory_space<vmem>>, vector<1x1xf32>
    %133 = vector.broadcast %132 : vector<1x1xf32> to vector<2x1xf32>
    %134 = arith.addf %131, %133 : vector<2x1xf32>
    %c0_79 = arith.constant 0 : index
    %c0_80 = arith.constant 0 : index
    %135 = vector.load %arg9[%c0_79, %c0_80] : memref<2x1xf32, #tpu.memory_space<vmem>>, vector<2x1xf32>
    tpu.vector_store %arg9[%c0_79, %c0_80], %134 {strides = array<i32>} : memref<2x1xf32, #tpu.memory_space<vmem>>, vector<2x1xf32>,
    return
  }
  func.func @transform_0(%arg0: i32) -> (i32, i32) {
    %c0_i32 = arith.constant 0 : i32
    %c0_i32_0 = arith.constant 0 : i32
    %c0_i32_1 = arith.constant 0 : i32
    return %c0_i32, %c0_i32_0 : i32, i32
  }
  func.func @transform_1(%arg0: i32) -> (i32, i32) {
    %c0_i32 = arith.constant 0 : i32
    %c0_i32_0 = arith.constant 0 : i32
    %c0_i32_1 = arith.constant 0 : i32
    return %c0_i32, %c0_i32_0 : i32, i32
  }
  func.func @transform_2(%arg0: i32) -> (i32, i32) {
    %c0_i32 = arith.constant 0 : i32
    %c0_i32_0 = arith.constant 0 : i32
    %c0_i32_1 = arith.constant 0 : i32
    return %c0_i32, %c0_i32_0 : i32, i32
  }
  func.func @transform_3(%arg0: i32) -> (i32, i32) {
    %c0_i32 = arith.constant 0 : i32
    %c0_i32_0 = arith.constant 0 : i32
    %c0_i32_1 = arith.constant 0 : i32
    return %c0_i32, %c0_i32_0 : i32, i32
  }
  func.func @transform_4(%arg0: i32) -> (i32, i32) {
    %c0_i32 = arith.constant 0 : i32
    %c0_i32_0 = arith.constant 0 : i32
    %c0_i32_1 = arith.constant 0 : i32
    return %c0_i32, %c0_i32_0 : i32, i32
  }
  func.func @transform_5(%arg0: i32) -> (i32, i32) {
    %c0_i32 = arith.constant 0 : i32
    %c0_i32_0 = arith.constant 0 : i32
    %c0_i32_1 = arith.constant 0 : i32
    return %c0_i32, %c0_i32_0 : i32, i32
  }
  func.func @transform_6(%arg0: i32) -> (i32, i32) {
    %c0_i32 = arith.constant 0 : i32
    %c0_i32_0 = arith.constant 0 : i32
    %c0_i32_1 = arith.constant 0 : i32
    return %c0_i32, %c0_i32_0 : i32, i32
  }
  func.func @transform_7(%arg0: i32) -> (i32, i32) {
    %c0_i32 = arith.constant 0 : i32
    %c0_i32_0 = arith.constant 0 : i32
    %c0_i32_1 = arith.constant 0 : i32
    return %c0_i32, %c0_i32_0 : i32, i32
  }
  func.func @transform_8(%arg0: i32) -> (i32, i32) {
    %c0_i32 = arith.constant 0 : i32
    %c0_i32_0 = arith.constant 0 : i32
    %c0_i32_1 = arith.constant 0 : i32
    return %c0_i32, %c0_i32_0 : i32, i32
  }
}

</mosaic_0001>

<bundles_post_ra>
// kernel: attacknet_forward.1
= control target key start
LH: loop header
LB: loop body
LE: loop exit
PB: predicated region body
PF: predicated region fallthrough
CT: control target
= control target key end

     0   :  { %vm41_vm0 = vcmask 1041408   ;;  %v2317_v0 = vmov 0.0   ;;  %vm2318_vm1 = vmmov 0   ;;  %v2319_v3 = vmov 0   ;;  %s2840_s6 = inlined_call_operand.vmem [shape: bf16[240,32], index: 6, kind: input, shape index: {}]   ;;  %s2841_s2 = inlined_call_operand.vmem [shape: bf16[2,4], index: 2, kind: input, shape index: {}]   ;;  %s2842_s3 = inlined_call_operand.vmem [shape: f32[4,1], index: 3, kind: input, shape index: {}]   ;;  %s2843_s7 = inlined_call_operand.vmem [shape: f32[88,32], index: 7, kind: input, shape index: {}]   ;;  %s2844_s4 = inlined_call_operand.vmem [shape: bf16[4,16], index: 4, kind: input, shape index: {}]   ;;  %s2845_s5 = inlined_call_operand.vmem [shape: bf16[4,16], index: 5, kind: input, shape index: {}]   ;;  %s2846_s0 = inlined_call_operand.vmem [shape: bf16[256,36], index: 0, kind: input, shape index: {}]   ;;  %s2847_s1 = inlined_call_operand.vmem [shape: bf16[256,18], index: 1, kind: input, shape index: {}]   ;;  %s2848_s8 = inlined_call_operand.vmem [shape: f32[2,1], index: 8, kind: output, shape index: {}]  }
   0x1   :  { %2092 = vmatprep.subr.bf16.mxu0 %v2317_v0  ;;  %v31_v1 = vld [vmem:[%s2840_s6] sm:$0x3]  ;;  %2094 = vmatprep.mubr.msk.bf16.mxu0 %vm2318_vm1, %v2317_v0  ;;  %vm37_vm2 = vcmask 31744   ;;  %vm113_vm3 = vcmask 1043456   ;;  %v87_v7 = vld [vmem:[%s2840_s6 + $0x3c] sm:$0xf] }
   0x2   :  { %v43_v2 = vsel %vm41_vm0, %v31_v1, 0  ;;  %2275 = vset.pattern.permute.xlu0 %v2319_v3  ;;  %v88_v4 = vld [vmem:[%s2842_s3] sm:$0xf]  ;;  %2098 = vmatprep.subr.bf16.mxu1 %v2317_v0  ;;  %v161_v9 = vsel %vm113_vm3, %v87_v7, 0  ;;  %v1921_v10 = vld [vmem:[%s2843_s7 + $0x8] ss:$0 sm:$0xff] }
   0x3   :  { %2093 = vmatpush3.bf16.msra.mxu0 %v43_v2  ;;  %v30_v5 = vld [vmem:[%s2841_s2] sm:$0x1]  ;;  %92 = vperm.xlu0 %2275, %v88_v4   ;;  %v1922_v11 = vld [vmem:[%s2843_s7 + $0x10] ss:$0 sm:$0xff]  ;;  %v203_v15 = vld [vmem:[%s2840_s6 + $0x44] sm:$0xf] }
   0x4   :  { %2104 = vmatprep.subr.bf16.mxu0 %v2317_v0  ;;  %2100 = vmatprep.mubr.msk.bf16.mxu1 %vm2318_vm1, %v2317_v0  ;;  %v108_v6 = vld [vmem:[%s2840_s6 + $0x40] sm:$0xf]  ;;  %vm109_vm4 = vcmask 64512   ;;  %v210_v18 = vsel %vm113_vm3, %v203_v15, 0  ;;  %v2276_v27 = vld [vmem:[%s2840_s6 + $0x4] sm:$0xff]   ;;  %vm267_vm5 = vcmask 130048  }
   0x5   :  { %v115_v8 = vsel %vm113_vm3, %v108_v6, 0  ;;  %v1919_v20 = vld [vmem:[%s2843_s7] ss:$0 sm:$0xff]  ;;  %v313_v30 = vld [vmem:[%s2840_s6 + $0x48] sm:$0xf]  ;;  %v2277_v55 = vld [vmem:[%s2840_s6 + $0xc] sm:$0xff]  }
   0x6   :  { %2095 = vmatmul.mubr.msk.bf16.vlgmr.msra.gmra.mrb[0].mxu0 %vm37_vm2, %v30_v5  ;;  %2099 = vmatpush3.bf16.msra.mxu1 %v115_v8  ;;  %v253_v29 = vld [vmem:[%s2844_s4] sm:$0x3]  ;;  %v318_v31 = vsel %vm113_vm3, %v313_v30, 0  ;;  %v361_v32 = vld [vmem:[%s2840_s6 + $0x4c] sm:$0xf]  ;;  %v2278_v62 = vld [vmem:[%s2840_s6 + $0x14] sm:$0xff]  }
   0x7   :  { %2106 = vmatprep.mubr.msk.bf16.mxu0 %vm2318_vm1, %v2317_v0  ;;  %2105 = vmatpush3.bf16.msra.mxu0 %v161_v9  ;;  %v368_v33 = vsel %vm113_vm3, %v361_v32, 0  ;;  %v1926_v48 = vld [vmem:[%s2843_s7 + $0x18] ss:$0 sm:$0xff]  ;;  %v411_v58 = vld [vmem:[%s2845_s5] sm:$0x3]  ;;  %vm705_vm6 = vcmask 293888  }
   0x8   :  { %2110 = vmatprep.subr.bf16.mxu1 %v2317_v0  ;;  %2116 = vmatprep.subr.bf16.mxu0 %v2317_v0  ;;  %v470_v59 = vld [vmem:[%s2840_s6 + $0x50] sm:$0xf]  ;;  %v518_v61 = vld [vmem:[%s2840_s6 + $0x54] sm:$0xf]  ;;  %v2288_v30 = vld [vmem:[%s2846_s0 + $0x38] sm:$0xff]   ;;  %vm1056_vm7 = vcmask 1041409  }
   0x9   :  { %v475_v60 = vsel %vm113_vm3, %v470_v59, 0  ;;  %v525_v63 = vsel %vm113_vm3, %v518_v61, 0  ;;  %v2290_v32 = vld [vmem:[%s2846_s0 + $0x48] sm:$0xff]   ;;  %vm1058_vm8 = vcmask 1042434   ;;  %vm1060_vm9 = vcmask 1043459  }
   0xa   :  { %vm1338_vm10 = vcmask 146432   ;;  %vm1387_vm11 = vcmask 1040384   ;;  %vm1869_vm12 = vcmask 261120   ;;  %vm1913_vm13 = vcmask 1024  }
  0x82   :  { %v93_v12 = vpop.permute.xlu0 %92 }
  0x83   :  { %v99_v13 = vmul.f32 %v1921_v10, %v93_v12 }
  0x85   :  { %v105_v14 = vadd.f32 %v1922_v11, %v99_v13  ;;  %v1931_v11 = vld [vmem:[%s2843_s7 + $0x20] ss:$0 sm:$0xff] }
  0x87   :  { %v106_v16 = vmax.f32 %v105_v14, 0.0 }
  0x89   :  { %v107_v17 = vpack.c.bf16 %v106_v16, %v106_v16 }
  0x8b   :  { %2101 = vmatmul.mubr.msk.bf16.vlgmr.msra.gmra.mrb[0].mxu1 %vm109_vm4, %v107_v17  ;;  %v205_v19 = vrot.slane %v107_v17, 1 }
  0x8c   :  { %2111 = vmatpush3.bf16.msra.mxu1 %v210_v18  ;;  %2112 = vmatprep.mubr.msk.bf16.mxu1 %vm2318_vm1, %v2317_v0  ;;  %v2281_v18 = vld [vmem:[%s2846_s0] sm:$0xff]  }
  0x8d   :  { %2122 = vmatprep.subr.bf16.mxu1 %v2317_v0 }
  0x93   :  { %2113 = vmatmul.mubr.msk.bf16.vlgmr.msra.gmra.mrb[4].mxu1 %vm109_vm4, %v205_v19 }
  0x94   :  { %2124 = vmatprep.mubr.msk.bf16.mxu1 %vm2318_vm1, %v2317_v0  ;;  %2123 = vmatpush3.bf16.msra.mxu1 %v318_v31  ;;  %v2289_v31 = vld [vmem:[%s2846_s0 + $0x40] sm:$0xff]  }
  0x95   :  { %2134 = vmatprep.subr.bf16.mxu1 %v2317_v0 }
  0xd9   :  { %v79_v21 = vpop.f32.mrb[0].mxu0 }
  0xda   :  { %v80_v22 = vadd.f32 %v1919_v20, %v79_v21  ;;  %v2096_v23 = vpop.f32.mrb[1].mxu0  ;;  %v2279_v20 = vld [vmem:[%s2840_s6 + $0x1c] sm:$0xff]  }
  0xdb   :  { %v82_v24 = vpop.f32.mrb[2].mxu0 }
  0xdc   :  { %v85_v25 = vmax.f32 %v80_v22, 0.0  ;;  %v2097_v26 = vpop.f32.mrb[3].mxu0  ;;  %v2280_v22 = vld [vmem:[%s2840_s6 + $0x24] ss:$0 sps:$4 sm:$0x33]   ;;  %v2282_v24 = vld [vmem:[%s2846_s0 + $0x8] sm:$0xff]  }
  0xdd   :  { %v755_v23 = vsel %vm41_vm0, %v2280_v22, 0  ;;  %v2284_v26 = vld [vmem:[%s2846_s0 + $0x18] sm:$0xff]  }
  0xde   :  { %v86_v28 = vpack.c.bf16 %v85_v25, %v85_v25  ;;  %v2283_v25 = vld [vmem:[%s2846_s0 + $0x10] sm:$0xff]  }
  0xe0   :  { %2107 = vmatmul.mubr.msk.bf16.vlgmr.msra.gmra.mrb[4].mxu0 %vm109_vm4, %v86_v28  ;;  %v2286_v28 = vld [vmem:[%s2846_s0 + $0x28] sm:$0xff]  }
  0xe1   :  { %2117 = vmatpush3.bf16.msra.mxu0 %v2276_v27  ;;  %2118 = vmatprep.mubr.msk.bf16.mxu0 %vm2318_vm1, %v2317_v0  ;;  %v2285_v27 = vld [vmem:[%s2846_s0 + $0x20] sm:$0xff]  }
  0xe2   :  { %2128 = vmatprep.subr.bf16.mxu0 %v2317_v0 }
  0xe8   :  { %2119 = vmatmul.mubr.msk.bf16.vlgmr.msra.gmra.mrb[8].mxu0 %vm267_vm5, %v253_v29  ;;  %v2287_v29 = vld [vmem:[%s2846_s0 + $0x30] sm:$0xff]  }
  0xe9   :  { %2130 = vmatprep.mubr.msk.bf16.mxu0 %vm2318_vm1, %v2317_v0  ;;  %2129 = vmatpush3.bf16.msra.mxu0 %v368_v33  ;;  %v2291_v33 = vld [vmem:[%s2846_s0 + $0x50] sm:$0xff]  }
  0xea   :  { %2140 = vmatprep.subr.bf16.mxu0 %v2317_v0 }
 0x15e   :  { %v151_v34 = vpop.f32.mrb[0].mxu1 }
 0x15f   :  { %v2102_v35 = vpop.f32.mrb[1].mxu1 }
 0x160   :  { %v154_v36 = vpop.f32.mrb[2].mxu1  ;;  %v2293_v35 = vld [vmem:[%s2846_s0 + $0x60] sm:$0xff]  }
 0x161   :  { %v2103_v37 = vpop.f32.mrb[3].mxu1  ;;  %v2294_v36 = vld [vmem:[%s2846_s0 + $0x68] sm:$0xff]  }
 0x162   :  { %v2295_v37 = vld [vmem:[%s2846_s0 + $0x70] sm:$0xff]  }
 0x166   :  { %v246_v38 = vpop.f32.mrb[4].mxu1 }
 0x167   :  { %v2114_v39 = vpop.f32.mrb[5].mxu1 }
 0x168   :  { %v249_v40 = vpop.f32.mrb[6].mxu1  ;;  %v1042_v39 = vld [vmem:[%s2840_s6 + $0x28] sm:$0xf] }
 0x169   :  { %v2115_v41 = vpop.f32.mrb[7].mxu1  ;;  %v1067_v40 = vsel %vm113_vm3, %v1042_v39, 0 }
 0x1b3   :  { %v197_v42 = vpop.f32.mrb[4].mxu0 }
 0x1b4   :  { %v198_v43 = vadd.f32 %v197_v42, %v151_v34  ;;  %v2108_v44 = vpop.f32.mrb[5].mxu0  ;;  %v2292_v34 = vld [vmem:[%s2846_s0 + $0x58] sm:$0xff]  }
 0x1b5   :  { %v200_v45 = vpop.f32.mrb[6].mxu0 }
 0x1b6   :  { %v252_v46 = vadd.f32 %v246_v38, %v198_v43  ;;  %v2109_v47 = vpop.f32.mrb[7].mxu0  ;;  %v2296_v38 = vld [vmem:[%s2846_s0 + $0x78] sm:$0xff]  }
 0x1bb   :  { %v305_v49 = vpop.f32.mrb[8].mxu0 }
 0x1bc   :  { %v306_v50 = vadd.f32 %v1926_v48, %v305_v49  ;;  %v2120_v51 = vpop.f32.mrb[9].mxu0 }
 0x1bd   :  { %v308_v52 = vpop.f32.mrb[10].mxu0  ;;  %v2563_v51 = vld [vmem:[%s2843_s7 + $0x28] ss:$0 sm:$0xff] }
 0x1be   :  { %v311_v53 = vmax.f32 %v306_v50, 0.0  ;;  %v2121_v54 = vpop.f32.mrb[11].mxu0 }
 0x1c0   :  { %v312_v56 = vpack.c.bf16 %v311_v53, %v311_v53 }
 0x1c2   :  { %v363_v57 = vrot.slane %v312_v56, 1  ;;  %2125 = vmatmul.mubr.msk.bf16.vlgmr.msra.gmra.mrb[8].mxu1 %vm109_vm4, %v312_v56 }
 0x1c3   :  { %2135 = vmatpush3.bf16.msra.mxu1 %v2277_v55  ;;  %2136 = vmatprep.mubr.msk.bf16.mxu1 %vm2318_vm1, %v2317_v0 }
 0x1c4   :  { %2131 = vmatmul.mubr.msk.bf16.vlgmr.msra.gmra.mrb[12].mxu0 %vm109_vm4, %v363_v57  ;;  %2146 = vmatprep.subr.bf16.mxu1 %v2317_v0 }
 0x1c5   :  { %2142 = vmatprep.mubr.msk.bf16.mxu0 %vm2318_vm1, %v2317_v0  ;;  %2141 = vmatpush3.bf16.msra.mxu0 %v475_v60 }
 0x1c6   :  { %2152 = vmatprep.subr.bf16.mxu0 %v2278_v62 }
 0x1ca   :  { %2137 = vmatmul.mubr.msk.bf16.vlgmr.msra.gmra.mrb[12].mxu1 %vm267_vm5, %v411_v58 }
 0x1cb   :  { %2148 = vmatprep.mubr.msk.bf16.mxu1 %vm2318_vm1, %v2317_v0  ;;  %2147 = vmatpush3.bf16.msra.mxu1 %v525_v63 }
 0x1cc   :  { %2190 = vmatprep.subr.bf16.mxu1 %v2317_v0 }
 0x295   :  { %v354_v1 = vpop.f32.mrb[8].mxu1 }
 0x296   :  { %v360_v2 = vadd.f32 %v354_v1, %v252_v46  ;;  %v2126_v3 = vpop.f32.mrb[9].mxu1 }
 0x297   :  { %v357_v4 = vpop.f32.mrb[10].mxu1  ;;  %v404_v5 = vpop.f32.mrb[12].mxu0 }
 0x298   :  { %v2468_v6 = vadd.f32 %v404_v5, %v360_v2  ;;  %v2127_v7 = vpop.f32.mrb[11].mxu1  ;;  %v2132_v8 = vpop.f32.mrb[13].mxu0 }
 0x299   :  { %v407_v9 = vpop.f32.mrb[14].mxu0 }
 0x29a   :  { %v2133_v10 = vpop.f32.mrb[15].mxu0 }
 0x29d   :  { %v462_v12 = vpop.f32.mrb[12].mxu1 }
 0x29e   :  { %v463_v13 = vadd.f32 %v1931_v11, %v462_v12  ;;  %v2138_v14 = vpop.f32.mrb[13].mxu1 }
 0x29f   :  { %v465_v15 = vpop.f32.mrb[14].mxu1 }
 0x2a0   :  { %v468_v16 = vmax.f32 %v463_v13, 0.0  ;;  %v2139_v17 = vpop.f32.mrb[15].mxu1 }
 0x2a2   :  { %v469_v19 = vpack.c.bf16 %v468_v16, %v468_v16 }
 0x2a4   :  { %v520_v21 = vrot.slane %v469_v19, 1  ;;  %2143 = vmatmul.mubr.msk.bf16.vlgmr.msra.gmra.mrb[16].mxu0 %vm109_vm4, %v469_v19 }
 0x2a5   :  { %2153 = vmatpush3.bf16.msra.mxu0 %v2278_v62  ;;  %2158 = vmatprep.mubr.msk.bf16.mxu0 %vm705_vm6, %v2281_v18 }
 0x2a6   :  { %2149 = vmatmul.mubr.msk.bf16.vlgmr.msra.gmra.mrb[16].mxu1 %vm109_vm4, %v520_v21  ;;  %2154 = vmatprep.subr.bf16.mxu0 %v2279_v20 }
 0x2a7   :  { %2192 = vmatprep.mubr.msk.bf16.mxu1 %vm2318_vm1, %v2317_v0  ;;  %2191 = vmatpush3.bf16.msra.mxu1 %v1067_v40 }
 0x2a8   :  { %2196 = vmatprep.subr.bf16.mxu1 %v2317_v0 }
 0x2a9   :  { %2155 = vmatpush3.bf16.msra.mxu0 %v2279_v20 }
 0x2aa   :  { %2270 = vmatprep.subr.msk.bf16.mxu0 %vm41_vm0, %v2280_v22 }
 0x2ad   :  { %2157 = vmatpush3.bf16.msra.mxu0 %v755_v23 }
 0x2ae   :  { %2244 = vmatprep.subr.bf16.mxu0 %v2317_v0 }
 0x2b0   :  { %2159 = vmatmul.mubr.msk.bf16.vlgmr.msra.gmra.mrb[20].mxu0 %vm705_vm6, %v2282_v24 }
 0x2b1   :  { %2162 = vmatprep.mubr.msk.bf16.mxu0 %vm705_vm6, %v2283_v25 }
 0x2b8   :  { %2163 = vmatmul.mubr.msk.bf16.gmra.mrb[24].mxu0 %vm705_vm6, %v2284_v26 }
 0x2b9   :  { %2166 = vmatprep.mubr.msk.bf16.mxu0 %vm705_vm6, %v2285_v27 }
 0x2c0   :  { %2167 = vmatmul.mubr.msk.bf16.gmra.mrb[28].mxu0 %vm705_vm6, %v2286_v28 }
 0x2c1   :  { %2170 = vmatprep.mubr.msk.bf16.mxu0 %vm705_vm6, %v2287_v29 }
 0x2c8   :  { %2171 = vmatmul.mubr.msk.bf16.gmra.mrb[32].mxu0 %vm705_vm6, %v2288_v30 }
 0x2c9   :  { %2174 = vmatprep.mubr.msk.bf16.mxu0 %vm705_vm6, %v2289_v31 }
 0x2d0   :  { %2175 = vmatmul.mubr.msk.bf16.gmra.mrb[36].mxu0 %vm705_vm6, %v2290_v32 }
 0x2d1   :  { %2178 = vmatprep.mubr.msk.bf16.mxu0 %vm705_vm6, %v2291_v33 }
 0x2d8   :  { %2179 = vmatmul.mubr.msk.bf16.gmra.mrb[40].mxu0 %vm705_vm6, %v2292_v34 }
 0x2d9   :  { %2182 = vmatprep.mubr.msk.bf16.mxu0 %vm705_vm6, %v2293_v35 }
 0x2e0   :  { %2183 = vmatmul.mubr.msk.bf16.gmra.mrb[44].mxu0 %vm705_vm6, %v2294_v36 }
 0x2e1   :  { %2186 = vmatprep.mubr.msk.bf16.mxu0 %vm705_vm6, %v2295_v37 }
 0x2e8   :  { %2187 = vmatmul.mubr.msk.bf16.gmra.mrb[48].mxu0 %vm705_vm6, %v2296_v38 }
 0x2e9   :  { %2246 = vmatprep.mubr.msk.bf16.mxu0 %vm2318_vm1, %v2317_v0 }
 0x377   :  { %v511_v41 = vpop.f32.mrb[16].mxu0 }
 0x378   :  { %v517_v42 = vadd.f32 %v511_v41, %v2468_v6  ;;  %v2144_v43 = vpop.f32.mrb[17].mxu0 }
 0x379   :  { %v514_v44 = vpop.f32.mrb[18].mxu0  ;;  %v561_v45 = vpop.f32.mrb[16].mxu1 }
 0x37a   :  { %v2558_v46 = vadd.f32 %v561_v45, %v517_v42  ;;  %v2145_v47 = vpop.f32.mrb[19].mxu0  ;;  %v2150_v48 = vpop.f32.mrb[17].mxu1 }
 0x37b   :  { %v564_v49 = vpop.f32.mrb[18].mxu1 }
 0x37c   :  { %v2151_v50 = vpop.f32.mrb[19].mxu1 }
 0x383   :  { %v2160_v52 = vpop.f32.mrb[20].mxu0 }
 0x384   :  { %v791_v53 = vpop.f32.mrb[21].mxu0  ;;  %v800_v54 = vadd.f32 %v2160_v52, %v2563_v51 }
 0x385   :  { %v792_v55 = vadd.f32 %v2563_v51, %v791_v53  ;;  %v2161_v56 = vpop.f32.mrb[22].mxu0 }
 0x386   :  { %v794_v57 = vpop.f32.mrb[23].mxu0  ;;  %v803_v59 = vadd.f32 %v2161_v56, %v2563_v51  ;;  %v920_v61 = vmax.f32 %v800_v54, 0.0 }
 0x387   :  { %v918_v58 = vmax.f32 %v792_v55, 0.0  ;;  %v795_v60 = vadd.f32 %v2563_v51, %v794_v57 }
 0x388   :  { %v921_v1 = vmax.f32 %v803_v59, 0.0  ;;  %v953_v6 = vsel %vm109_vm4, %v920_v61, 0.0 }
 0x389   :  { %v919_v62 = vmax.f32 %v795_v60, 0.0  ;;  %v950_v63 = vsel %vm109_vm4, %v918_v58, 0.0 }
 0x38a   :  { %v955_v12 = vsel %vm109_vm4, %v921_v1, 0.0 }
 0x38b   :  { %v951_v2 = vsel %vm109_vm4, %v919_v62, 0.0  ;;  %v2164_v3 = vpop.f32.mrb[24].mxu0 }
 0x38c   :  { %v952_v4 = vadd.f32 %v951_v2, %v950_v63  ;;  %v807_v5 = vpop.f32.mrb[25].mxu0  ;;  %v816_v7 = vadd.f32 %v2164_v3, %v2563_v51 }
 0x38d   :  { %v808_v8 = vadd.f32 %v2563_v51, %v807_v5  ;;  %v2165_v9 = vpop.f32.mrb[26].mxu0 }
 0x38e   :  { %v954_v10 = vadd.f32 %v953_v6, %v952_v4  ;;  %v810_v11 = vpop.f32.mrb[27].mxu0  ;;  %v819_v14 = vadd.f32 %v2165_v9, %v2563_v51  ;;  %v924_v17 = vmax.f32 %v816_v7, 0.0 }
 0x38f   :  { %v922_v13 = vmax.f32 %v808_v8, 0.0  ;;  %v811_v15 = vadd.f32 %v2563_v51, %v810_v11 }
 0x390   :  { %v956_v16 = vadd.f32 %v955_v12, %v954_v10  ;;  %v925_v21 = vmax.f32 %v819_v14, 0.0  ;;  %v961_v26 = vsel %vm109_vm4, %v924_v17, 0.0 }
 0x391   :  { %v957_v18 = vsel %vm109_vm4, %v922_v13, 0.0  ;;  %v923_v19 = vmax.f32 %v811_v15, 0.0 }
 0x392   :  { %v958_v20 = vadd.f32 %v957_v18, %v956_v16  ;;  %v963_v32 = vsel %vm109_vm4, %v925_v21, 0.0 }
 0x393   :  { %v959_v22 = vsel %vm109_vm4, %v923_v19, 0.0  ;;  %v2168_v23 = vpop.f32.mrb[28].mxu0 }
 0x394   :  { %v960_v24 = vadd.f32 %v959_v22, %v958_v20  ;;  %v823_v25 = vpop.f32.mrb[29].mxu0  ;;  %v832_v27 = vadd.f32 %v2168_v23, %v2563_v51 }
 0x395   :  { %v824_v28 = vadd.f32 %v2563_v51, %v823_v25  ;;  %v2169_v29 = vpop.f32.mrb[30].mxu0 }
 0x396   :  { %v962_v30 = vadd.f32 %v961_v26, %v960_v24  ;;  %v826_v31 = vpop.f32.mrb[31].mxu0  ;;  %v835_v34 = vadd.f32 %v2169_v29, %v2563_v51  ;;  %v928_v37 = vmax.f32 %v832_v27, 0.0 }
 0x397   :  { %v926_v33 = vmax.f32 %v824_v28, 0.0  ;;  %v827_v35 = vadd.f32 %v2563_v51, %v826_v31 }
 0x398   :  { %v964_v36 = vadd.f32 %v963_v32, %v962_v30  ;;  %v929_v41 = vmax.f32 %v835_v34, 0.0  ;;  %v974_v47 = vsel %vm109_vm4, %v928_v37, 0.0 }
 0x399   :  { %v927_v38 = vmax.f32 %v827_v35, 0.0  ;;  %v971_v40 = vsel %vm109_vm4, %v926_v33, 0.0 }
 0x39a   :  { %v965_v39 = vrot.slane %v964_v36, 4  ;;  %v976_v55 = vsel %vm109_vm4, %v929_v41, 0.0 }
 0x39b   :  { %v972_v42 = vsel %vm109_vm4, %v927_v38, 0.0  ;;  %v2172_v43 = vpop.f32.mrb[32].mxu0 }
 0x39c   :  { %v973_v44 = vadd.f32 %v972_v42, %v971_v40  ;;  %v839_v45 = vpop.f32.mrb[33].mxu0  ;;  %v848_v48 = vadd.f32 %v2172_v43, %v2563_v51  ;;  %v966_v52 = vadd.f32 %v965_v39, %v964_v36 }
 0x39d   :  { %v840_v49 = vadd.f32 %v2563_v51, %v839_v45  ;;  %v2173_v50 = vpop.f32.mrb[34].mxu0 }
 0x39e   :  { %v975_v53 = vadd.f32 %v974_v47, %v973_v44  ;;  %v842_v54 = vpop.f32.mrb[35].mxu0  ;;  %v851_v57 = vadd.f32 %v2173_v50, %v2563_v51  ;;  %v932_v60 = vmax.f32 %v848_v48, 0.0  ;;  %v967_v63 = vrot.slane %v966_v52, 2 }
 0x39f   :  { %v930_v56 = vmax.f32 %v840_v49, 0.0  ;;  %v843_v58 = vadd.f32 %v2563_v51, %v842_v54 }
 0x3a0   :  { %v977_v59 = vadd.f32 %v976_v55, %v975_v53  ;;  %v933_v2 = vmax.f32 %v851_v57, 0.0  ;;  %v982_v7 = vsel %vm109_vm4, %v932_v60, 0.0  ;;  %v968_v11 = vadd.f32 %v967_v63, %v966_v52 }
 0x3a1   :  { %v978_v61 = vsel %vm109_vm4, %v930_v56, 0.0  ;;  %v931_v62 = vmax.f32 %v843_v58, 0.0 }
 0x3a2   :  { %v979_v1 = vadd.f32 %v978_v61, %v977_v59  ;;  %v984_v14 = vsel %vm109_vm4, %v933_v2, 0.0  ;;  %v969_v21 = vrot.slane %v968_v11, 1 }
 0x3a3   :  { %v980_v3 = vsel %vm109_vm4, %v931_v62, 0.0  ;;  %v2176_v4 = vpop.f32.mrb[36].mxu0 }
 0x3a4   :  { %v981_v5 = vadd.f32 %v980_v3, %v979_v1  ;;  %v855_v6 = vpop.f32.mrb[37].mxu0  ;;  %v864_v8 = vadd.f32 %v2176_v4, %v2563_v51  ;;  %v970_v34 = vadd.f32 %v969_v21, %v968_v11 }
 0x3a5   :  { %v856_v9 = vadd.f32 %v2563_v51, %v855_v6  ;;  %v2177_v10 = vpop.f32.mrb[38].mxu0 }
 0x3a6   :  { %v983_v12 = vadd.f32 %v982_v7, %v981_v5  ;;  %v858_v13 = vpop.f32.mrb[39].mxu0  ;;  %v867_v16 = vadd.f32 %v2177_v10, %v2563_v51  ;;  %v936_v19 = vmax.f32 %v864_v8, 0.0  ;;  %v1034_v48 = vmul.f32 0.015625, %v970_v34 }
 0x3a7   :  { %v934_v15 = vmax.f32 %v856_v9, 0.0  ;;  %v859_v17 = vadd.f32 %v2563_v51, %v858_v13 }
 0x3a8   :  { %v985_v18 = vadd.f32 %v984_v14, %v983_v12  ;;  %v937_v24 = vmax.f32 %v867_v16, 0.0  ;;  %v995_v30 = vsel %vm109_vm4, %v936_v19, 0.0  ;;  %v1038_v62 = vpack.c.bf16 %v1034_v48, %v1034_v48 }
 0x3a9   :  { %v935_v20 = vmax.f32 %v859_v17, 0.0  ;;  %v992_v23 = vsel %vm109_vm4, %v934_v15, 0.0 }
 0x3aa   :  { %v986_v22 = vrot.slane %v985_v18, 4  ;;  %v997_v38 = vsel %vm109_vm4, %v937_v24, 0.0  ;;  %v1052_v11 = vunpack.c.l.b16 %v1038_v62  ;;  %v1111_v62 = vld [vmem:[%s2840_s6 + $0x58] sm:$0xf] }
 0x3ab   :  { %v993_v25 = vsel %vm109_vm4, %v935_v20, 0.0  ;;  %v2180_v26 = vpop.f32.mrb[40].mxu0 }
 0x3ac   :  { %v987_v27 = vadd.f32 %v986_v22, %v985_v18  ;;  %v994_v28 = vadd.f32 %v993_v25, %v992_v23  ;;  %v871_v29 = vpop.f32.mrb[41].mxu0  ;;  %v880_v31 = vadd.f32 %v2180_v26, %v2563_v51 }
 0x3ad   :  { %v872_v32 = vadd.f32 %v2563_v51, %v871_v29  ;;  %v2181_v33 = vpop.f32.mrb[42].mxu0 }
 0x3ae   :  { %v988_v35 = vrot.slane %v987_v27, 2  ;;  %v996_v36 = vadd.f32 %v995_v30, %v994_v28  ;;  %v874_v37 = vpop.f32.mrb[43].mxu0  ;;  %v883_v40 = vadd.f32 %v2181_v33, %v2563_v51  ;;  %v940_v44 = vmax.f32 %v880_v31, 0.0 }
 0x3af   :  { %v938_v39 = vmax.f32 %v872_v32, 0.0  ;;  %v875_v41 = vadd.f32 %v2563_v51, %v874_v37 }
 0x3b0   :  { %v989_v42 = vadd.f32 %v988_v35, %v987_v27  ;;  %v998_v43 = vadd.f32 %v997_v38, %v996_v36  ;;  %v941_v52 = vmax.f32 %v883_v40, 0.0  ;;  %v1003_v58 = vsel %vm109_vm4, %v940_v44, 0.0 }
 0x3b1   :  { %v999_v45 = vsel %vm109_vm4, %v938_v39, 0.0  ;;  %v939_v47 = vmax.f32 %v875_v41, 0.0 }
 0x3b2   :  { %v990_v49 = vrot.slane %v989_v42, 1  ;;  %v1000_v50 = vadd.f32 %v999_v45, %v998_v43  ;;  %v1005_v3 = vsel %vm109_vm4, %v941_v52, 0.0 }
 0x3b3   :  { %v1001_v53 = vsel %vm109_vm4, %v939_v47, 0.0  ;;  %v2184_v54 = vpop.f32.mrb[44].mxu0 }
 0x3b4   :  { %v991_v55 = vadd.f32 %v990_v49, %v989_v42  ;;  %v1002_v56 = vadd.f32 %v1001_v53, %v1000_v50  ;;  %v887_v57 = vpop.f32.mrb[45].mxu0  ;;  %v896_v59 = vadd.f32 %v2184_v54, %v2563_v51 }
 0x3b5   :  { %v888_v60 = vadd.f32 %v2563_v51, %v887_v57  ;;  %v2185_v61 = vpop.f32.mrb[46].mxu0 }
 0x3b6   :  { %v1035_v63 = vmul.f32 0.015625, %v991_v55  ;;  %v1004_v1 = vadd.f32 %v1003_v58, %v1002_v56  ;;  %v890_v2 = vpop.f32.mrb[47].mxu0  ;;  %v899_v5 = vadd.f32 %v2185_v61, %v2563_v51  ;;  %v944_v9 = vmax.f32 %v896_v59, 0.0 }
 0x3b7   :  { %v942_v4 = vmax.f32 %v888_v60, 0.0  ;;  %v891_v6 = vadd.f32 %v2563_v51, %v890_v2  ;;  %v1116_v2 = vsel %vm113_vm3, %v1111_v62, 0 }
 0x3b8   :  { %v1039_v7 = vpack.c.bf16 %v1035_v63, %v1035_v63  ;;  %v1006_v8 = vadd.f32 %v1005_v3, %v1004_v1  ;;  %v945_v15 = vmax.f32 %v899_v5, 0.0  ;;  %v1016_v22 = vsel %vm109_vm4, %v944_v9, 0.0  ;;  %v1972_v3 = vld [vmem:[%s2843_s7 + $0x30] ss:$0 sm:$0xff] }
 0x3b9   :  { %v943_v10 = vmax.f32 %v891_v6, 0.0  ;;  %v1013_v14 = vsel %vm109_vm4, %v942_v4, 0.0 }
 0x3ba   :  { %v1053_v12 = vunpack.c.l.b16 %v1039_v7  ;;  %v1007_v13 = vrot.slane %v1006_v8, 4  ;;  %v1018_v29 = vsel %vm109_vm4, %v945_v15, 0.0 }
 0x3bb   :  { %v1014_v16 = vsel %vm109_vm4, %v943_v10, 0.0  ;;  %v2188_v17 = vpop.f32.mrb[48].mxu0 }
 0x3bc   :  { %v1008_v18 = vadd.f32 %v1007_v13, %v1006_v8  ;;  %v1015_v19 = vadd.f32 %v1014_v16, %v1013_v14  ;;  %v903_v20 = vpop.f32.mrb[49].mxu0  ;;  %v1057_v21 = vsel %vm1056_vm7, %v1053_v12, %v1052_v11  ;;  %v912_v23 = vadd.f32 %v2188_v17, %v2563_v51  ;;  %v1159_v8 = vld [vmem:[%s2840_s6 + $0x5c] sm:$0xf]  ;;  %v2297_v13 = vld [vmem:[%s2840_s6 + $0x2c] sm:$0xff]   ;;  %v2299_v14 = vld [vmem:[%s2847_s1] sm:$0xff]  }
 0x3bd   :  { %v904_v24 = vadd.f32 %v2563_v51, %v903_v20  ;;  %v2189_v25 = vpop.f32.mrb[50].mxu0  ;;  %v1166_v12 = vsel %vm113_vm3, %v1159_v8, 0  ;;  %v2298_v16 = vld [vmem:[%s2840_s6 + $0x34] ss:$0 sps:$4 sm:$0x11]   ;;  %v2302_v20 = vld [vmem:[%s2847_s1 + $0x18] sm:$0xff]  }
 0x3be   :  { %v1009_v26 = vrot.slane %v1008_v18, 2  ;;  %v1017_v27 = vadd.f32 %v1016_v22, %v1015_v19  ;;  %v906_v28 = vpop.f32.mrb[51].mxu0  ;;  %v915_v31 = vadd.f32 %v2189_v25, %v2563_v51  ;;  %v948_v35 = vmax.f32 %v912_v23, 0.0  ;;  %v2301_v19 = vld [vmem:[%s2847_s1 + $0x10] sm:$0xff]   ;;  %v2304_v22 = vld [vmem:[%s2847_s1 + $0x28] sm:$0xff]   ;;  %v2307_v25 = vld [vmem:[%s2847_s1 + $0x40] sm:$0xff]  }
 0x3bf   :  { %v946_v30 = vmax.f32 %v904_v24, 0.0  ;;  %v907_v32 = vadd.f32 %v2563_v51, %v906_v28  ;;  %v1389_v17 = vsel %vm1387_vm11, %v2298_v16, 0  ;;  %v2305_v23 = vld [vmem:[%s2847_s1 + $0x30] sm:$0xff]   ;;  %v2306_v24 = vld [vmem:[%s2847_s1 + $0x38] sm:$0xff]  }
 0x3c0   :  { %v1010_v33 = vadd.f32 %v1009_v26, %v1008_v18  ;;  %v1019_v34 = vadd.f32 %v1018_v29, %v1017_v27  ;;  %v949_v40 = vmax.f32 %v915_v31, 0.0  ;;  %v1024_v44 = vsel %vm109_vm4, %v948_v35, 0.0  ;;  %v2300_v18 = vld [vmem:[%s2847_s1 + $0x8] sm:$0xff]   ;;  %v2309_v27 = vld [vmem:[%s2847_s1 + $0x50] sm:$0xff]   ;;  %v2310_v28 = vld [vmem:[%s2847_s1 + $0x58] sm:$0xff]  }
 0x3c1   :  { %v1020_v36 = vsel %vm109_vm4, %v946_v30, 0.0  ;;  %v947_v37 = vmax.f32 %v907_v32, 0.0  ;;  %v2308_v26 = vld [vmem:[%s2847_s1 + $0x48] sm:$0xff]   ;;  %v2311_v29 = vld [vmem:[%s2847_s1 + $0x60] sm:$0xff]   ;;  %v2313_v31 = vld [vmem:[%s2847_s1 + $0x70] sm:$0xff]  }
 0x3c2   :  { %v1011_v38 = vrot.slane %v1010_v33, 1  ;;  %v1021_v39 = vadd.f32 %v1020_v36, %v1019_v34  ;;  %v1026_v48 = vsel %vm109_vm4, %v949_v40, 0.0  ;;  %v2312_v30 = vld [vmem:[%s2847_s1 + $0x68] sm:$0xff]   ;;  %v2314_v32 = vld [vmem:[%s2847_s1 + $0x78] sm:$0xff]  }
 0x3c3   :  { %v1022_v41 = vsel %vm109_vm4, %v947_v37, 0.0 }
 0x3c4   :  { %v1012_v42 = vadd.f32 %v1011_v38, %v1010_v33  ;;  %v1023_v43 = vadd.f32 %v1022_v41, %v1021_v39  ;;  %v1676_v33 = vld [vmem:[%s2840_s6 + $0x38] sm:$0xf] }
 0x3c5   :  { %v1698_v34 = vsel %vm113_vm3, %v1676_v33, 0 }
 0x3c6   :  { %v1036_v45 = vmul.f32 0.015625, %v1012_v42  ;;  %v1025_v47 = vadd.f32 %v1024_v44, %v1023_v43  ;;  %2245 = vmatpush3.bf16.msra.mxu0 %v1698_v34 }
 0x3c7   :  { %2250 = vmatprep.subr.bf16.mxu0 %v2317_v0 }
 0x3c8   :  { %v1040_v51 = vpack.c.bf16 %v1036_v45, %v1036_v45  ;;  %v1027_v49 = vadd.f32 %v1026_v48, %v1025_v47  ;;  %v2735_v45 = vld [vmem:[%s2843_s7 + $0x38] ss:$0 sm:$0xff] }
 0x3ca   :  { %v1054_v50 = vunpack.c.l.b16 %v1040_v51  ;;  %v1028_v52 = vrot.slane %v1027_v49, 4 }
 0x3cc   :  { %v1029_v53 = vadd.f32 %v1028_v52, %v1027_v49  ;;  %v1059_v54 = vsel %vm1058_vm8, %v1054_v50, %v1057_v21  ;;  %v2303_v21 = vld [vmem:[%s2847_s1 + $0x20] sm:$0xff]  }
 0x3ce   :  { %v1030_v55 = vrot.slane %v1029_v53, 2 }
 0x3d0   :  { %v1031_v56 = vadd.f32 %v1030_v55, %v1029_v53 }
 0x3d2   :  { %v1032_v57 = vrot.slane %v1031_v56, 1 }
 0x3d4   :  { %v1033_v58 = vadd.f32 %v1032_v57, %v1031_v56 }
 0x3d6   :  { %v1037_v59 = vmul.f32 0.015625, %v1033_v58 }
 0x3d8   :  { %v1041_v60 = vpack.c.bf16 %v1037_v59, %v1037_v59 }
 0x3da   :  { %v1055_v61 = vunpack.c.l.b16 %v1041_v60 }
 0x3dc   :  { %v1061_v63 = vsel %vm1060_vm9, %v1055_v61, %v1059_v54 }
 0x3dd   :  { %v1062_v1 = vpack.c.b16 %v1061_v63, %v1061_v63 }
 0x3df   :  { %2193 = vmatmul.mubr.msk.bf16.vlgmr.msra.gmra.mrb[20].mxu1 %vm109_vm4, %v1062_v1 }
 0x3e0   :  { %2197 = vmatpush3.bf16.msra.mxu1 %v1116_v2  ;;  %2198 = vmatprep.mubr.msk.bf16.mxu1 %vm2318_vm1, %v2317_v0 }
 0x3e1   :  { %2202 = vmatprep.subr.bf16.mxu1 %v2317_v0 }
 0x4b2   :  { %v1103_v4 = vpop.f32.mrb[20].mxu1 }
 0x4b3   :  { %v1104_v5 = vadd.f32 %v1972_v3, %v1103_v4  ;;  %v2194_v6 = vpop.f32.mrb[21].mxu1 }
 0x4b4   :  { %v1106_v7 = vpop.f32.mrb[22].mxu1 }
 0x4b5   :  { %v1109_v9 = vmax.f32 %v1104_v5, 0.0  ;;  %v2195_v10 = vpop.f32.mrb[23].mxu1 }
 0x4b7   :  { %v1110_v11 = vpack.c.bf16 %v1109_v9, %v1109_v9 }
 0x4b9   :  { %2199 = vmatmul.mubr.msk.bf16.vlgmr.msra.gmra.mrb[24].mxu1 %vm109_vm4, %v1110_v11  ;;  %v1161_v15 = vrot.slane %v1110_v11, 1 }
 0x4ba   :  { %2203 = vmatpush3.bf16.msra.mxu1 %v1166_v12  ;;  %2204 = vmatprep.mubr.msk.bf16.mxu1 %vm2318_vm1, %v2317_v0 }
 0x4bb   :  { %2208 = vmatprep.subr.bf16.mxu1 %v2297_v13 }
 0x4c1   :  { %2205 = vmatmul.mubr.msk.bf16.vlgmr.msra.gmra.mrb[28].mxu1 %vm109_vm4, %v1161_v15 }
 0x4c2   :  { %2209 = vmatpush3.bf16.msra.mxu1 %v2297_v13  ;;  %2212 = vmatprep.mubr.msk.bf16.mxu1 %vm1338_vm10, %v2299_v14 }
 0x4c3   :  { %2271 = vmatprep.subr.msk.bf16.mxu1 %vm1387_vm11, %v2298_v16 }
 0x4c6   :  { %2211 = vmatpush3.bf16.msra.mxu1 %v1389_v17 }
 0x4c7   :  { %2262 = vmatprep.subr.bf16.mxu1 %v2317_v0 }
 0x4c9   :  { %2213 = vmatmul.mubr.msk.bf16.vlgmr.msra.gmra.mrb[32].mxu1 %vm1338_vm10, %v2300_v18 }
 0x4ca   :  { %2216 = vmatprep.mubr.msk.bf16.mxu1 %vm1338_vm10, %v2301_v19 }
 0x4d1   :  { %2217 = vmatmul.mubr.msk.bf16.gmra.mrb[36].mxu1 %vm1338_vm10, %v2302_v20 }
 0x4d2   :  { %2220 = vmatprep.mubr.msk.bf16.mxu1 %vm1338_vm10, %v2303_v21 }
 0x4d9   :  { %2221 = vmatmul.mubr.msk.bf16.gmra.mrb[40].mxu1 %vm1338_vm10, %v2304_v22 }
 0x4da   :  { %2224 = vmatprep.mubr.msk.bf16.mxu1 %vm1338_vm10, %v2305_v23 }
 0x4e1   :  { %2225 = vmatmul.mubr.msk.bf16.gmra.mrb[44].mxu1 %vm1338_vm10, %v2306_v24 }
 0x4e2   :  { %2228 = vmatprep.mubr.msk.bf16.mxu1 %vm1338_vm10, %v2307_v25 }
 0x4e9   :  { %2229 = vmatmul.mubr.msk.bf16.gmra.mrb[48].mxu1 %vm1338_vm10, %v2308_v26 }
 0x4ea   :  { %2232 = vmatprep.mubr.msk.bf16.mxu1 %vm1338_vm10, %v2309_v27 }
 0x4f1   :  { %2233 = vmatmul.mubr.msk.bf16.gmra.mrb[52].mxu1 %vm1338_vm10, %v2310_v28 }
 0x4f2   :  { %2236 = vmatprep.mubr.msk.bf16.mxu1 %vm1338_vm10, %v2311_v29 }
 0x4f9   :  { %2237 = vmatmul.mubr.msk.bf16.gmra.mrb[56].mxu1 %vm1338_vm10, %v2312_v30 }
 0x4fa   :  { %2240 = vmatprep.mubr.msk.bf16.mxu1 %vm1338_vm10, %v2313_v31 }
 0x501   :  { %2241 = vmatmul.mubr.msk.bf16.gmra.mrb[60].mxu1 %vm1338_vm10, %v2314_v32 }
 0x502   :  { %2266 = vmatprep.mubr.msk.bf16.mxu1 %vm2318_vm1, %v2317_v0 }
 0x58c   :  { %v1152_v35 = vpop.f32.mrb[24].mxu1 }
 0x58d   :  { %v1158_v36 = vadd.f32 %v1152_v35, %v2558_v46  ;;  %v2200_v37 = vpop.f32.mrb[25].mxu1 }
 0x58e   :  { %v1155_v38 = vpop.f32.mrb[26].mxu1 }
 0x58f   :  { %v2201_v39 = vpop.f32.mrb[27].mxu1 }
 0x594   :  { %v1202_v40 = vpop.f32.mrb[28].mxu1 }
 0x595   :  { %v2730_v41 = vadd.f32 %v1202_v40, %v1158_v36  ;;  %v2206_v42 = vpop.f32.mrb[29].mxu1 }
 0x596   :  { %v1205_v43 = vpop.f32.mrb[30].mxu1 }
 0x597   :  { %v2207_v44 = vpop.f32.mrb[31].mxu1 }
 0x59c   :  { %v2214_v47 = vpop.f32.mrb[32].mxu1 }
 0x59d   :  { %v1425_v48 = vpop.f32.mrb[33].mxu1  ;;  %v1434_v51 = vadd.f32 %v2214_v47, %v2735_v45 }
 0x59e   :  { %v1426_v46 = vadd.f32 %v2735_v45, %v1425_v48  ;;  %v2215_v49 = vpop.f32.mrb[34].mxu1 }
 0x59f   :  { %v1428_v50 = vpop.f32.mrb[35].mxu1  ;;  %v1437_v53 = vadd.f32 %v2215_v49, %v2735_v45  ;;  %v1554_v55 = vmax.f32 %v1434_v51, 0.0 }
 0x5a0   :  { %v1552_v52 = vmax.f32 %v1426_v46, 0.0  ;;  %v1429_v54 = vadd.f32 %v2735_v45, %v1428_v50 }
 0x5a1   :  { %v1555_v58 = vmax.f32 %v1437_v53, 0.0  ;;  %v1587_v63 = vsel %vm109_vm4, %v1554_v55, 0.0 }
 0x5a2   :  { %v1553_v56 = vmax.f32 %v1429_v54, 0.0  ;;  %v1584_v57 = vsel %vm109_vm4, %v1552_v52, 0.0 }
 0x5a3   :  { %v1589_v6 = vsel %vm109_vm4, %v1555_v58, 0.0 }
 0x5a4   :  { %v1585_v59 = vsel %vm109_vm4, %v1553_v56, 0.0  ;;  %v2218_v60 = vpop.f32.mrb[36].mxu1 }
 0x5a5   :  { %v1586_v61 = vadd.f32 %v1585_v59, %v1584_v57  ;;  %v1441_v62 = vpop.f32.mrb[37].mxu1  ;;  %v1450_v1 = vadd.f32 %v2218_v60, %v2735_v45 }
 0x5a6   :  { %v1442_v2 = vadd.f32 %v2735_v45, %v1441_v62  ;;  %v2219_v3 = vpop.f32.mrb[38].mxu1 }
 0x5a7   :  { %v1588_v4 = vadd.f32 %v1587_v63, %v1586_v61  ;;  %v1444_v5 = vpop.f32.mrb[39].mxu1  ;;  %v1453_v8 = vadd.f32 %v2219_v3, %v2735_v45  ;;  %v1558_v11 = vmax.f32 %v1450_v1, 0.0 }
 0x5a8   :  { %v1556_v7 = vmax.f32 %v1442_v2, 0.0  ;;  %v1445_v9 = vadd.f32 %v2735_v45, %v1444_v5 }
 0x5a9   :  { %v1590_v10 = vadd.f32 %v1589_v6, %v1588_v4  ;;  %v1559_v15 = vmax.f32 %v1453_v8, 0.0  ;;  %v1595_v20 = vsel %vm109_vm4, %v1558_v11, 0.0 }
 0x5aa   :  { %v1591_v12 = vsel %vm109_vm4, %v1556_v7, 0.0  ;;  %v1557_v13 = vmax.f32 %v1445_v9, 0.0 }
 0x5ab   :  { %v1592_v14 = vadd.f32 %v1591_v12, %v1590_v10  ;;  %v1597_v26 = vsel %vm109_vm4, %v1559_v15, 0.0 }
 0x5ac   :  { %v1593_v16 = vsel %vm109_vm4, %v1557_v13, 0.0  ;;  %v2222_v17 = vpop.f32.mrb[40].mxu1 }
 0x5ad   :  { %v1594_v18 = vadd.f32 %v1593_v16, %v1592_v14  ;;  %v1457_v19 = vpop.f32.mrb[41].mxu1  ;;  %v1466_v21 = vadd.f32 %v2222_v17, %v2735_v45 }
 0x5ae   :  { %v1458_v22 = vadd.f32 %v2735_v45, %v1457_v19  ;;  %v2223_v23 = vpop.f32.mrb[42].mxu1 }
 0x5af   :  { %v1596_v24 = vadd.f32 %v1595_v20, %v1594_v18  ;;  %v1460_v25 = vpop.f32.mrb[43].mxu1  ;;  %v1469_v28 = vadd.f32 %v2223_v23, %v2735_v45  ;;  %v1562_v31 = vmax.f32 %v1466_v21, 0.0 }
 0x5b0   :  { %v1560_v27 = vmax.f32 %v1458_v22, 0.0  ;;  %v1461_v29 = vadd.f32 %v2735_v45, %v1460_v25 }
 0x5b1   :  { %v1598_v30 = vadd.f32 %v1597_v26, %v1596_v24  ;;  %v1563_v35 = vmax.f32 %v1469_v28, 0.0  ;;  %v1608_v40 = vsel %vm109_vm4, %v1562_v31, 0.0 }
 0x5b2   :  { %v1561_v32 = vmax.f32 %v1461_v29, 0.0  ;;  %v1605_v34 = vsel %vm109_vm4, %v1560_v27, 0.0 }
 0x5b3   :  { %v1599_v33 = vrot.slane %v1598_v30, 4  ;;  %v1610_v46 = vsel %vm109_vm4, %v1563_v35, 0.0 }
 0x5b4   :  { %v1606_v36 = vsel %vm109_vm4, %v1561_v32, 0.0  ;;  %v2226_v37 = vpop.f32.mrb[44].mxu1 }
 0x5b5   :  { %v1607_v38 = vadd.f32 %v1606_v36, %v1605_v34  ;;  %v1473_v39 = vpop.f32.mrb[45].mxu1  ;;  %v1482_v42 = vadd.f32 %v2226_v37, %v2735_v45  ;;  %v1600_v47 = vadd.f32 %v1599_v33, %v1598_v30 }
 0x5b6   :  { %v1474_v43 = vadd.f32 %v2735_v45, %v1473_v39  ;;  %v2227_v44 = vpop.f32.mrb[46].mxu1 }
 0x5b7   :  { %v1609_v48 = vadd.f32 %v1608_v40, %v1607_v38  ;;  %v1476_v51 = vpop.f32.mrb[47].mxu1  ;;  %v1485_v50 = vadd.f32 %v2227_v44, %v2735_v45  ;;  %v1566_v54 = vmax.f32 %v1482_v42, 0.0  ;;  %v1601_v57 = vrot.slane %v1600_v47, 2 }
 0x5b8   :  { %v1564_v49 = vmax.f32 %v1474_v43, 0.0  ;;  %v1477_v52 = vadd.f32 %v2735_v45, %v1476_v51 }
 0x5b9   :  { %v1611_v53 = vadd.f32 %v1610_v46, %v1609_v48  ;;  %v1567_v59 = vmax.f32 %v1485_v50, 0.0  ;;  %v1616_v1 = vsel %vm109_vm4, %v1566_v54, 0.0  ;;  %v1602_v5 = vadd.f32 %v1601_v57, %v1600_v47 }
 0x5ba   :  { %v1612_v55 = vsel %vm109_vm4, %v1564_v49, 0.0  ;;  %v1565_v56 = vmax.f32 %v1477_v52, 0.0 }
 0x5bb   :  { %v1613_v58 = vadd.f32 %v1612_v55, %v1611_v53  ;;  %v1618_v8 = vsel %vm109_vm4, %v1567_v59, 0.0  ;;  %v1603_v15 = vrot.slane %v1602_v5, 1 }
 0x5bc   :  { %v1614_v60 = vsel %vm109_vm4, %v1565_v56, 0.0  ;;  %v2230_v61 = vpop.f32.mrb[48].mxu1 }
 0x5bd   :  { %v1615_v62 = vadd.f32 %v1614_v60, %v1613_v58  ;;  %v1489_v63 = vpop.f32.mrb[49].mxu1  ;;  %v1498_v2 = vadd.f32 %v2230_v61, %v2735_v45  ;;  %v1604_v28 = vadd.f32 %v1603_v15, %v1602_v5 }
 0x5be   :  { %v1490_v3 = vadd.f32 %v2735_v45, %v1489_v63  ;;  %v2231_v4 = vpop.f32.mrb[50].mxu1 }
 0x5bf   :  { %v1617_v6 = vadd.f32 %v1616_v1, %v1615_v62  ;;  %v1492_v7 = vpop.f32.mrb[51].mxu1  ;;  %v1501_v10 = vadd.f32 %v2231_v4, %v2735_v45  ;;  %v1570_v13 = vmax.f32 %v1498_v2, 0.0  ;;  %v1668_v42 = vmul.f32 0.015625, %v1604_v28 }
 0x5c0   :  { %v1568_v9 = vmax.f32 %v1490_v3, 0.0  ;;  %v1493_v11 = vadd.f32 %v2735_v45, %v1492_v7 }
 0x5c1   :  { %v1619_v12 = vadd.f32 %v1618_v8, %v1617_v6  ;;  %v1571_v18 = vmax.f32 %v1501_v10, 0.0  ;;  %v1629_v24 = vsel %vm109_vm4, %v1570_v13, 0.0  ;;  %v1672_v56 = vpack.c.bf16 %v1668_v42, %v1668_v42 }
 0x5c2   :  { %v1569_v14 = vmax.f32 %v1493_v11, 0.0  ;;  %v1626_v17 = vsel %vm109_vm4, %v1568_v9, 0.0 }
 0x5c3   :  { %v1620_v16 = vrot.slane %v1619_v12, 4  ;;  %v1631_v32 = vsel %vm109_vm4, %v1571_v18, 0.0  ;;  %v1686_v5 = vunpack.c.l.b16 %v1672_v56  ;;  %v1742_v56 = vld [vmem:[%s2840_s6 + $0x60] sm:$0xf] }
 0x5c4   :  { %v1627_v19 = vsel %vm109_vm4, %v1569_v14, 0.0  ;;  %v2234_v20 = vpop.f32.mrb[52].mxu1 }
 0x5c5   :  { %v1621_v21 = vadd.f32 %v1620_v16, %v1619_v12  ;;  %v1628_v22 = vadd.f32 %v1627_v19, %v1626_v17  ;;  %v1505_v23 = vpop.f32.mrb[53].mxu1  ;;  %v1514_v25 = vadd.f32 %v2234_v20, %v2735_v45 }
 0x5c6   :  { %v1506_v26 = vadd.f32 %v2735_v45, %v1505_v23  ;;  %v2235_v27 = vpop.f32.mrb[54].mxu1 }
 0x5c7   :  { %v1622_v29 = vrot.slane %v1621_v21, 2  ;;  %v1630_v30 = vadd.f32 %v1629_v24, %v1628_v22  ;;  %v1508_v31 = vpop.f32.mrb[55].mxu1  ;;  %v1517_v34 = vadd.f32 %v2235_v27, %v2735_v45  ;;  %v1574_v38 = vmax.f32 %v1514_v25, 0.0 }
 0x5c8   :  { %v1572_v33 = vmax.f32 %v1506_v26, 0.0  ;;  %v1509_v35 = vadd.f32 %v2735_v45, %v1508_v31 }
 0x5c9   :  { %v1623_v36 = vadd.f32 %v1622_v29, %v1621_v21  ;;  %v1632_v37 = vadd.f32 %v1631_v32, %v1630_v30  ;;  %v1575_v47 = vmax.f32 %v1517_v34, 0.0  ;;  %v1637_v52 = vsel %vm109_vm4, %v1574_v38, 0.0 }
 0x5ca   :  { %v1633_v39 = vsel %vm109_vm4, %v1572_v33, 0.0  ;;  %v1573_v40 = vmax.f32 %v1509_v35, 0.0 }
 0x5cb   :  { %v1624_v43 = vrot.slane %v1623_v36, 1  ;;  %v1634_v44 = vadd.f32 %v1633_v39, %v1632_v37  ;;  %v1639_v60 = vsel %vm109_vm4, %v1575_v47, 0.0 }
 0x5cc   :  { %v1635_v48 = vsel %vm109_vm4, %v1573_v40, 0.0  ;;  %v2238_v51 = vpop.f32.mrb[56].mxu1 }
 0x5cd   :  { %v1625_v46 = vadd.f32 %v1624_v43, %v1623_v36  ;;  %v1636_v49 = vadd.f32 %v1635_v48, %v1634_v44  ;;  %v1521_v50 = vpop.f32.mrb[57].mxu1  ;;  %v1530_v53 = vadd.f32 %v2238_v51, %v2735_v45 }
 0x5ce   :  { %v1522_v54 = vadd.f32 %v2735_v45, %v1521_v50  ;;  %v2239_v55 = vpop.f32.mrb[58].mxu1 }
 0x5cf   :  { %v1669_v57 = vmul.f32 0.015625, %v1625_v46  ;;  %v1638_v58 = vadd.f32 %v1637_v52, %v1636_v49  ;;  %v1524_v59 = vpop.f32.mrb[59].mxu1  ;;  %v1533_v62 = vadd.f32 %v2239_v55, %v2735_v45  ;;  %v1578_v3 = vmax.f32 %v1530_v53, 0.0 }
 0x5d0   :  { %v1576_v61 = vmax.f32 %v1522_v54, 0.0  ;;  %v1525_v63 = vadd.f32 %v2735_v45, %v1524_v59  ;;  %v1747_v59 = vsel %vm113_vm3, %v1742_v56, 0 }
 0x5d1   :  { %v1673_v1 = vpack.c.bf16 %v1669_v57, %v1669_v57  ;;  %v1640_v2 = vadd.f32 %v1639_v60, %v1638_v58  ;;  %v1579_v9 = vmax.f32 %v1533_v62, 0.0  ;;  %v1650_v16 = vsel %vm109_vm4, %v1578_v3, 0.0  ;;  %v2315_v60 = vld [vmem:[%s2840_s6 + $0x68] sm:$0xff]   ;;  %v2011_v62 = vld [vmem:[%s2843_s7 + $0x40] ss:$0 sm:$0xff] }
 0x5d2   :  { %v1577_v4 = vmax.f32 %v1525_v63, 0.0  ;;  %v1647_v8 = vsel %vm109_vm4, %v1576_v61, 0.0  ;;  %2263 = vmatpush3.bf16.msra.mxu1 %v2315_v60  ;;  %v2316_v61 = vld [vmem:[%s2840_s6 + $0x70] sm:$0xff]  }
 0x5d3   :  { %v1687_v6 = vunpack.c.l.b16 %v1673_v1  ;;  %v1641_v7 = vrot.slane %v1640_v2, 4  ;;  %v1652_v23 = vsel %vm109_vm4, %v1579_v9, 0.0  ;;  %2264 = vmatprep.subr.bf16.mxu1 %v2317_v0 }
 0x5d4   :  { %v1648_v10 = vsel %vm109_vm4, %v1577_v4, 0.0  ;;  %v2242_v11 = vpop.f32.mrb[60].mxu1  ;;  %v1790_v4 = vld [vmem:[%s2840_s6 + $0x64] sm:$0xf] }
 0x5d5   :  { %v1690_v12 = vsel %vm1056_vm7, %v1687_v6, %v1686_v5  ;;  %v1642_v13 = vadd.f32 %v1641_v7, %v1640_v2  ;;  %v1649_v14 = vadd.f32 %v1648_v10, %v1647_v8  ;;  %v1537_v15 = vpop.f32.mrb[61].mxu1  ;;  %v1546_v17 = vadd.f32 %v2242_v11, %v2735_v45 }
 0x5d6   :  { %v1538_v18 = vadd.f32 %v2735_v45, %v1537_v15  ;;  %v2243_v19 = vpop.f32.mrb[62].mxu1  ;;  %2265 = vmatpush3.bf16.msra.mxu1 %v2316_v61  ;;  %v1797_v8 = vsel %vm113_vm3, %v1790_v4, 0 }
 0x5d7   :  { %v1643_v20 = vrot.slane %v1642_v13, 2  ;;  %v1651_v21 = vadd.f32 %v1650_v16, %v1649_v14  ;;  %v1540_v22 = vpop.f32.mrb[63].mxu1  ;;  %v1549_v25 = vadd.f32 %v2243_v19, %v2735_v45  ;;  %v1582_v29 = vmax.f32 %v1546_v17, 0.0  ;;  %v2015_v16 = vld [vmem:[%s2843_s7 + $0x48] ss:$0 sm:$0xff] }
 0x5d8   :  { %v1580_v24 = vmax.f32 %v1538_v18, 0.0  ;;  %v1541_v26 = vadd.f32 %v2735_v45, %v1540_v22 }
 0x5d9   :  { %v1644_v27 = vadd.f32 %v1643_v20, %v1642_v13  ;;  %v1653_v28 = vadd.f32 %v1652_v23, %v1651_v21  ;;  %v1583_v34 = vmax.f32 %v1549_v25, 0.0  ;;  %v1658_v38 = vsel %vm109_vm4, %v1582_v29, 0.0 }
 0x5da   :  { %v1654_v30 = vsel %vm109_vm4, %v1580_v24, 0.0  ;;  %v1581_v31 = vmax.f32 %v1541_v26, 0.0 }
 0x5db   :  { %v1645_v32 = vrot.slane %v1644_v27, 1  ;;  %v1655_v33 = vadd.f32 %v1654_v30, %v1653_v28  ;;  %v1660_v42 = vsel %vm109_vm4, %v1583_v34, 0.0 }
 0x5dc   :  { %v1656_v35 = vsel %vm109_vm4, %v1581_v31, 0.0 }
 0x5dd   :  { %v1646_v36 = vadd.f32 %v1645_v32, %v1644_v27  ;;  %v1657_v37 = vadd.f32 %v1656_v35, %v1655_v33 }
 0x5df   :  { %v1670_v39 = vmul.f32 0.015625, %v1646_v36  ;;  %v1659_v40 = vadd.f32 %v1658_v38, %v1657_v37 }
 0x5e1   :  { %v1674_v45 = vpack.c.bf16 %v1670_v39, %v1670_v39  ;;  %v1661_v43 = vadd.f32 %v1660_v42, %v1659_v40 }
 0x5e3   :  { %v1688_v44 = vunpack.c.l.b16 %v1674_v45  ;;  %v1662_v47 = vrot.slane %v1661_v43, 4 }
 0x5e5   :  { %v1663_v48 = vadd.f32 %v1662_v47, %v1661_v43  ;;  %v1691_v51 = vsel %vm1058_vm8, %v1688_v44, %v1690_v12 }
 0x5e7   :  { %v1664_v46 = vrot.slane %v1663_v48, 2 }
 0x5e9   :  { %v1665_v49 = vadd.f32 %v1664_v46, %v1663_v48 }
 0x5eb   :  { %v1666_v50 = vrot.slane %v1665_v49, 1 }
 0x5ed   :  { %v1667_v52 = vadd.f32 %v1666_v50, %v1665_v49 }
 0x5ef   :  { %v1671_v53 = vmul.f32 0.015625, %v1667_v52 }
 0x5f1   :  { %v1675_v54 = vpack.c.bf16 %v1671_v53, %v1671_v53 }
 0x5f3   :  { %v1689_v55 = vunpack.c.l.b16 %v1675_v54 }
 0x5f5   :  { %v1692_v57 = vsel %vm1060_vm9, %v1689_v55, %v1691_v51 }
 0x5f6   :  { %v1693_v58 = vpack.c.b16 %v1692_v57, %v1692_v57 }
 0x5f8   :  { %2247 = vmatmul.mubr.msk.bf16.vlgmr.msra.gmra.mrb[52].mxu0 %vm109_vm4, %v1693_v58 }
 0x5f9   :  { %2251 = vmatpush3.bf16.msra.mxu0 %v1747_v59  ;;  %2252 = vmatprep.mubr.msk.bf16.mxu0 %vm2318_vm1, %v2317_v0 }
 0x5fa   :  { %2256 = vmatprep.subr.bf16.mxu0 %v2317_v0 }
 0x6cb   :  { %v1734_v63 = vpop.f32.mrb[52].mxu0 }
 0x6cc   :  { %v1735_v1 = vadd.f32 %v2011_v62, %v1734_v63  ;;  %v2248_v2 = vpop.f32.mrb[53].mxu0 }
 0x6cd   :  { %v1737_v3 = vpop.f32.mrb[54].mxu0 }
 0x6ce   :  { %v1740_v5 = vmax.f32 %v1735_v1, 0.0  ;;  %v2249_v6 = vpop.f32.mrb[55].mxu0 }
 0x6d0   :  { %v1741_v7 = vpack.c.bf16 %v1740_v5, %v1740_v5 }
 0x6d2   :  { %2253 = vmatmul.mubr.msk.bf16.vlgmr.msra.gmra.mrb[56].mxu0 %vm109_vm4, %v1741_v7  ;;  %v1792_v9 = vrot.slane %v1741_v7, 1 }
 0x6d3   :  { %2257 = vmatpush3.bf16.msra.mxu0 %v1797_v8  ;;  %2258 = vmatprep.mubr.msk.bf16.mxu0 %vm2318_vm1, %v2317_v0 }
 0x6da   :  { %2259 = vmatmul.mubr.msk.bf16.vlgmr.msra.gmra.mrb[60].mxu0 %vm109_vm4, %v1792_v9 }
 0x7a5   :  { %v1783_v10 = vpop.f32.mrb[56].mxu0 }
 0x7a6   :  { %v1789_v11 = vadd.f32 %v1783_v10, %v2730_v41  ;;  %v2254_v12 = vpop.f32.mrb[57].mxu0  ;;  %v2016_v41 = vld [vmem:[%s2843_s7 + $0x50] ss:$0 sm:$0xff] }
 0x7a7   :  { %v1786_v13 = vpop.f32.mrb[58].mxu0 }
 0x7a8   :  { %v2255_v14 = vpop.f32.mrb[59].mxu0 }
 0x7ad   :  { %v1833_v15 = vpop.f32.mrb[60].mxu0 }
 0x7ae   :  { %v1839_v17 = vadd.f32 %v1833_v15, %v1789_v11  ;;  %v2260_v18 = vpop.f32.mrb[61].mxu0 }
 0x7af   :  { %v1836_v19 = vpop.f32.mrb[62].mxu0 }
 0x7b0   :  { %v1845_v20 = vadd.f32 %v2015_v16, %v1839_v17  ;;  %v2261_v21 = vpop.f32.mrb[63].mxu0 }
 0x7b2   :  { %v1846_v0 = vmax.f32 %v1845_v20, 0.0 }
 0x7b4   :  { %v1847_v22 = vpack.c.bf16 %v1846_v0, %v1846_v0 }
 0x7b6   :  { %2267 = vmatmul.mubr.msk.bf16.vlgmr.msra.gmra.mrb[64].mxu1 %vm1869_vm12, %v1847_v22 }
 0x889   :  { %v1907_v23 = vpop.f32.mrb[64].mxu1 }
 0x88a   :  { %v1908_v24 = vadd.f32 %v2016_v41, %v1907_v23  ;;  %v2268_v25 = vpop.f32.mrb[65].mxu1 }
 0x88b   :  { %v1910_v26 = vpop.f32.mrb[66].mxu1 }
 0x88c   :  { %1914 = vst.msk [vmem:[%s2848_s8] sm:$0x3] %vm1913_vm13, %v1908_v24  ;;  %v2269_v27 = vpop.f32.mrb[67].mxu1 }

</bundles_post_ra>
